<compile_context>
chip_gen: v5e
topology: v5e:2x2
jax: 0.10.0
libtpu: 0.0.40
codegen_flags: <defaults>
</compile_context>

<pallas_src>
from functools import partial

import jax
import jax.numpy as jnp
from jax.experimental import pallas as pl
from jax.experimental.pallas import tpu as pltpu


def make_mlp_kernel(n_lin, chunk):
    """Fused channel-major MLP kernel: linear -> (relu -> linear)* -> sigmoid.

    Ref layout (all VMEM blocks, channels on sublanes, points N on lanes):
      x_ref                    : f32  [d_in_total, tile_n]
      w0_ref, b0_ref           : f32  [H0, d_in_total], f32 [H0, 1]
      (w_l, b_l), l=1..n_lin-1 : bf16 [H_l, H_{l-1}],   f32 [H_l, 1]
      out_ref                  : f32  [d_out_pad, tile_n]
    """

    def kernel(x_ref, w0_ref, b0_ref, *rest):
        out_ref = rest[-1]
        wb = rest[:-1]
        assert len(wb) == 2 * (n_lin - 1)

        tile = x_ref.shape[1]
        assert tile % chunk == 0
        n_chunks = tile // chunk

        # Hoist weight/bias loads out of the chunk loop.
        w0 = w0_ref[...]
        b0 = b0_ref[...]
        hidden = [(wb[2 * i][...], wb[2 * i + 1][...]) for i in range(n_lin - 1)]

        f32 = jnp.float32
        # Unrolled inner loop over 512-lane chunks: keeps each live [H, chunk]
        # activation small (no vreg spills) while the big BlockSpec tile
        # amortizes per-grid-step overhead. Static slices -> zero-cost views.
        for c in range(n_chunks):
            sl = slice(c * chunk, (c + 1) * chunk)
            # Layer 0 in full f32 (K is tiny; keeps point coords at full precision).
            h = jnp.dot(w0, x_ref[:, sl], preferred_element_type=f32) + b0
            # Hidden layers: ReLU (f32) -> bf16 cast -> MXU matmul -> bias (f32).
            for (w, b) in hidden:
                h = jnp.maximum(h, 0.0).astype(jnp.bfloat16)
                h = jnp.dot(w, h, preferred_element_type=f32) + b
            out_ref[:, sl] = jax.nn.sigmoid(h).astype(out_ref.dtype)

    return kernel


def prepare_params(params, *, sublane_pad=8):
    """One-time parameter preprocessing (hoisted out of the forward path).

    params: list of (W, b) with W [out, in] (torch Linear layout, weight_norm
            already folded), b [out].
    Returns a tuple of (W, b[:, None]) with:
      * layer 0 kept in float32 (accuracy on raw point/view/normal coords),
      * layers >= 1 cast to bf16 weights / f32 column biases,
      * the last layer zero-padded to `sublane_pad` output rows so the kernel's
        output block uses full 8-sublane f32 stores.
    """
    n_lin = len(params)
    prepared = []
    for l, (w, b) in enumerate(params):
        w = jnp.asarray(w, jnp.float32)
        b = jnp.asarray(b, jnp.float32)
        if l == n_lin - 1:
            pad = (-w.shape[0]) % sublane_pad
            if pad:
                w = jnp.pad(w, ((0, pad), (0, 0)))
                b = jnp.pad(b, ((0, pad),))
        if l > 0:
            w = w.astype(jnp.bfloat16)
        prepared.append((w, b.reshape(-1, 1)))
    return tuple(prepared)


@partial(jax.jit, static_argnames=("d_out", "tile_n", "chunk"))
def rendering_network_forward(points, normals, view_dirs, feature_vectors,
                              prepared_params, *, d_out, tile_n=2048, chunk=512):
    """Forward pass of RenderingNetwork. Returns [N, d_out] float32."""
    N = points.shape[0]
    n_lin = len(prepared_params)

    # Fused concat (torch order: points, view_dirs, normals, feats), one
    # transpose to channel-major, one pad. All fused by XLA under jit.
    x = jnp.concatenate([points, view_dirs, normals, feature_vectors], axis=-1)
    d_in_total = x.shape[1]
    x_cm = x.T.astype(jnp.float32)                       # [C, N], N on lanes

    assert chunk % 128 == 0
    if tile_n % chunk:
        raise ValueError("tile_n must be a multiple of chunk")
    tile_n = max(chunk, min(tile_n, pl.cdiv(N, chunk) * chunk))

    grid_n = pl.cdiv(N, tile_n)
    n_pad = grid_n * tile_n
    if n_pad != N:
        x_cm = jnp.pad(x_cm, ((0, 0), (0, n_pad - N)))

    w0, b0 = prepared_params[0]
    h0 = w0.shape[0]
    d_out_pad = prepared_params[-1][0].shape[0]

    flat_args = [x_cm, w0, b0]
    in_specs = [
        pl.BlockSpec((d_in_total, tile_n), lambda i: (0, i)),
        pl.BlockSpec((h0, d_in_total), lambda i: (0, 0)),
        pl.BlockSpec((h0, 1), lambda i: (0, 0)),
    ]
    for (w, b) in prepared_params[1:]:
        dout_l, din_l = w.shape
        flat_args += [w, b]
        in_specs += [pl.BlockSpec((dout_l, din_l), lambda i: (0, 0)),
                     pl.BlockSpec((dout_l, 1), lambda i: (0, 0))]

    # Advisory cost estimate so XLA schedules the surrounding transpose/pad ops
    # sensibly around the custom call.
    flops = int(2 * n_pad * sum(w.shape[0] * w.shape[1] for (w, _) in prepared_params))
    bytes_accessed = int(
        x_cm.size * x_cm.dtype.itemsize
        + sum(w.size * w.dtype.itemsize + b.size * b.dtype.itemsize
              for (w, b) in prepared_params)
        + d_out_pad * n_pad * 4)
    cost = pl.CostEstimate(flops=flops,
                           transcendentals=int(d_out_pad * n_pad),
                           bytes_accessed=bytes_accessed)

    out_cm = pl.pallas_call(
        make_mlp_kernel(n_lin, chunk),
        out_shape=jax.ShapeDtypeStruct((d_out_pad, n_pad), jnp.float32),
        grid=(grid_n,),
        in_specs=in_specs,
        out_specs=pl.BlockSpec((d_out_pad, tile_n), lambda i: (0, i)),
        compiler_params=pltpu.CompilerParams(
            dimension_semantics=("parallel",)),
        cost_estimate=cost,
    )(*flat_args)

    # Drop padded rows/columns and return the module's [N, d_out] layout
    # (slice + transpose fuse inside this jit).
    return out_cm[:d_out, :N].T


def init_params(key, dims):
    """Deterministic synthetic params reproducing nn.utils.weight_norm(nn.Linear)
    (dim=0): effective W = g * v / ||v||_row, stored as [out, in]."""
    params = []
    for l in range(len(dims) - 1):
        din, dout = dims[l], dims[l + 1]
        key, k1, k2, k3 = jax.random.split(key, 4)
        v = jax.random.normal(k1, (dout, din), jnp.float32) * 0.1
        g = jax.random.uniform(k2, (dout, 1), jnp.float32, minval=0.5, maxval=1.5)
        b = jax.random.normal(k3, (dout,), jnp.float32) * 0.01
        w_eff = g * v / jnp.linalg.norm(v, axis=1, keepdims=True)   # [out, in]
        params.append((w_eff, b))
    return params


def reference_forward(points, normals, view_dirs, feature_vectors, params,
                      match_kernel=False):
    """Plain-JAX reference with exact torch-module semantics.
    match_kernel=True mirrors kernel numerics (f32 layer 0, bf16 hidden layers,
    f32 accumulation)."""
    x = jnp.concatenate([points, view_dirs, normals, feature_vectors],
                        axis=-1).astype(jnp.float32)
    n_lin = len(params)
    for l, (w, b) in enumerate(params):
        w = jnp.asarray(w, jnp.float32)
        b = jnp.asarray(b, jnp.float32)
        if match_kernel and l > 0:
            x = x.astype(jnp.bfloat16)
            w = w.astype(jnp.bfloat16)
            prec = None
        else:
            prec = jax.lax.Precision.HIGHEST
        x = jnp.dot(x, w.T, preferred_element_type=jnp.float32,
                    precision=prec) + b
        if l < n_lin - 1:
            x = jnp.maximum(x, 0.0)
    return jax.nn.sigmoid(x)


if __name__ == "__main__":
    # Shapes consistent with the module's forward:
    #   points (N,3), normals (N,3), view_dirs (N,3), feature_vectors (N,F)
    feature_vector_size = 8
    d_in = 9                      # 3 (points) + 3 (view_dirs) + 3 (normals)
    d_out = 3
    hidden = [32, 32]
    dims = [d_in + feature_vector_size] + hidden + [d_out]   # [17, 32, 32, 3]

    N = 4096                      # 2 grid steps of tile_n=2048 (>=1 per v7x TC)
    tile_n = 2048
    chunk = 512

    key = jax.random.PRNGKey(0)
    kp, kn, kv, kf, kw = jax.random.split(key, 5)
    points = jax.random.uniform(kp, (N, 3), jnp.float32, minval=-1.0, maxval=1.0)
    normals = jax.random.normal(kn, (N, 3), jnp.float32)
    normals = normals / jnp.linalg.norm(normals, axis=-1, keepdims=True)
    view_dirs = jax.random.normal(kv, (N, 3), jnp.float32)
    view_dirs = view_dirs / jnp.linalg.norm(view_dirs, axis=-1, keepdims=True)
    feature_vectors = 0.5 * jax.random.normal(kf, (N, feature_vector_size),
                                              jnp.float32)

    params = init_params(kw, dims)
    prepared = prepare_params(params)            # one-time, cached outside forward

    out = rendering_network_forward(points, normals, view_dirs, feature_vectors,
                                    prepared, d_out=d_out,
                                    tile_n=tile_n, chunk=chunk)
    out = jax.block_until_ready(out)
    assert out.shape == (N, d_out) and out.dtype == jnp.float32

    # Reference mirroring the kernel numerics (f32 layer 0, bf16 hidden layers).
    ref_q = reference_forward(points, normals, view_dirs, feature_vectors,
                              params, match_kernel=True)
    # Full-precision reference = exact module semantics.
    ref_f = reference_forward(points, normals, view_dirs, feature_vectors,
                              params, match_kernel=False)

    err_q = float(jnp.max(jnp.abs(out - ref_q)))
    err_f = float(jnp.max(jnp.abs(out - ref_f)))
    assert err_q < 5e-3, f"mismatch vs kernel-matched reference: {err_q}"
    assert err_f < 2e-2, f"mismatch vs f32 reference: {err_f}"
    print("KERNEL_OK")
</pallas_src>

<mosaic_0001>
module attributes {stable_mosaic.version = 11 : i64} {
  func.func @kernel(%arg0: i32, %arg1: memref<17x2048xf32, #tpu.memory_space<vmem>>, %arg2: memref<32x17xf32, #tpu.memory_space<vmem>>, %arg3: memref<32x1xf32, #tpu.memory_space<vmem>>, %arg4: memref<32x32xbf16, #tpu.memory_space<vmem>>, %arg5: memref<32x1xf32, #tpu.memory_space<vmem>>, %arg6: memref<8x32xbf16, #tpu.memory_space<vmem>>, %arg7: memref<8x1xf32, #tpu.memory_space<vmem>>, %arg8: memref<8x2048xf32, #tpu.memory_space<vmem>>) attributes {dimension_semantics = [#tpu.dimension_semantics<parallel>], iteration_bounds = array<i64: 2>, scalar_prefetch = 0 : i64, scratch_operands = 0 : i64, tpu.core_type = #tpu.core_type<tc>, window_params = [{transform_indices = @transform_0, window_bounds = array<i64: 17, 2048>}, {pipeline_mode = #tpu.pipeline_mode<synchronous>, transform_indices = @transform_1, window_bounds = array<i64: 32, 17>}, {pipeline_mode = #tpu.pipeline_mode<synchronous>, transform_indices = @transform_2, window_bounds = array<i64: 32, 1>}, {pipeline_mode = #tpu.pipeline_mode<synchronous>, transform_indices = @transform_3, window_bounds = array<i64: 32, 32>}, {pipeline_mode = #tpu.pipeline_mode<synchronous>, transform_indices = @transform_4, window_bounds = array<i64: 32, 1>}, {pipeline_mode = #tpu.pipeline_mode<synchronous>, transform_indices = @transform_5, window_bounds = array<i64: 8, 32>}, {pipeline_mode = #tpu.pipeline_mode<synchronous>, transform_indices = @transform_6, window_bounds = array<i64: 8, 1>}, {transform_indices = @transform_7, window_bounds = array<i64: 8, 2048>}]} {
    %c0 = arith.constant 0 : index
    %c0_0 = arith.constant 0 : index
    %0 = vector.load %arg2[%c0, %c0_0] : memref<32x17xf32, #tpu.memory_space<vmem>>, vector<32x17xf32>
    %c0_1 = arith.constant 0 : index
    %c0_2 = arith.constant 0 : index
    %1 = vector.load %arg3[%c0_1, %c0_2] : memref<32x1xf32, #tpu.memory_space<vmem>>, vector<32x1xf32>
    %c0_3 = arith.constant 0 : index
    %c0_4 = arith.constant 0 : index
    %2 = vector.load %arg4[%c0_3, %c0_4] : memref<32x32xbf16, #tpu.memory_space<vmem>>, vector<32x32xbf16>
    %c0_5 = arith.constant 0 : index
    %c0_6 = arith.constant 0 : index
    %3 = vector.load %arg5[%c0_5, %c0_6] : memref<32x1xf32, #tpu.memory_space<vmem>>, vector<32x1xf32>
    %c0_7 = arith.constant 0 : index
    %c0_8 = arith.constant 0 : index
    %4 = vector.load %arg6[%c0_7, %c0_8] : memref<8x32xbf16, #tpu.memory_space<vmem>>, vector<8x32xbf16>
    %c0_9 = arith.constant 0 : index
    %c0_10 = arith.constant 0 : index
    %5 = vector.load %arg7[%c0_9, %c0_10] : memref<8x1xf32, #tpu.memory_space<vmem>>, vector<8x1xf32>
    %c0_11 = arith.constant 0 : index
    %c0_12 = arith.constant 0 : index
    %6 = vector.load %arg1[%c0_11, %c0_12] : memref<17x2048xf32, #tpu.memory_space<vmem>>, vector<17x512xf32>
    %cst = arith.constant dense<0.000000e+00> : vector<32x512xf32>
    %7 = tpu.matmul %0, %6, %cst {dimension_numbers = #tpu.dot_dimension_numbers<[1], [0], [0], [1], [0, 0, 1, 1], [], []>} : vector<32x17xf32>, vector<17x512xf32>, vector<32x512xf32> -> vector<32x512xf32>
    %8 = vector.broadcast %1 : vector<32x1xf32> to vector<32x512xf32>
    %9 = arith.addf %7, %8 : vector<32x512xf32>
    %cst_13 = arith.constant 0.000000e+00 : f32
    %10 = vector.broadcast %cst_13 : f32 to vector<32x512xf32>
    %11 = arith.maximumf %9, %10 : vector<32x512xf32>
    %12 = arith.truncf %11 : vector<32x512xf32> to vector<32x512xbf16>
    %cst_14 = arith.constant dense<0.000000e+00> : vector<32x512xf32>
    %13 = tpu.matmul %2, %12, %cst_14 {dimension_numbers = #tpu.dot_dimension_numbers<[1], [0], [0], [1], [0, 0, 1, 1], [], []>} : vector<32x32xbf16>, vector<32x512xbf16>, vector<32x512xf32> -> vector<32x512xf32>
    %14 = vector.broadcast %3 : vector<32x1xf32> to vector<32x512xf32>
    %15 = arith.addf %13, %14 : vector<32x512xf32>
    %cst_15 = arith.constant 0.000000e+00 : f32
    %16 = vector.broadcast %cst_15 : f32 to vector<32x512xf32>
    %17 = arith.maximumf %15, %16 : vector<32x512xf32>
    %18 = arith.truncf %17 : vector<32x512xf32> to vector<32x512xbf16>
    %cst_16 = arith.constant dense<0.000000e+00> : vector<8x512xf32>
    %19 = tpu.matmul %4, %18, %cst_16 {dimension_numbers = #tpu.dot_dimension_numbers<[1], [0], [0], [1], [0, 0, 1, 1], [], []>} : vector<8x32xbf16>, vector<32x512xbf16>, vector<8x512xf32> -> vector<8x512xf32>
    %20 = vector.broadcast %5 : vector<8x1xf32> to vector<8x512xf32>
    %21 = arith.addf %19, %20 : vector<8x512xf32>
    %22 = arith.negf %21 : vector<8x512xf32>
    %23 = math.exp %22 : vector<8x512xf32>
    %cst_17 = arith.constant 1.000000e+00 : f32
    %24 = vector.broadcast %cst_17 : f32 to vector<8x512xf32>
    %25 = arith.addf %24, %23 : vector<8x512xf32>
    %26 = arith.divf %24, %25 : vector<8x512xf32>
    %c0_18 = arith.constant 0 : index
    %c0_19 = arith.constant 0 : index
    %27 = vector.load %arg8[%c0_18, %c0_19] : memref<8x2048xf32, #tpu.memory_space<vmem>>, vector<8x512xf32>
    tpu.vector_store %arg8[%c0_18, %c0_19], %26 {strides = array<i32>} : memref<8x2048xf32, #tpu.memory_space<vmem>>, vector<8x512xf32>,
    %c0_20 = arith.constant 0 : index
    %c512 = arith.constant 512 : index
    %28 = vector.load %arg1[%c0_20, %c512] : memref<17x2048xf32, #tpu.memory_space<vmem>>, vector<17x512xf32>
    %cst_21 = arith.constant dense<0.000000e+00> : vector<32x512xf32>
    %29 = tpu.matmul %0, %28, %cst_21 {dimension_numbers = #tpu.dot_dimension_numbers<[1], [0], [0], [1], [0, 0, 1, 1], [], []>} : vector<32x17xf32>, vector<17x512xf32>, vector<32x512xf32> -> vector<32x512xf32>
    %30 = vector.broadcast %1 : vector<32x1xf32> to vector<32x512xf32>
    %31 = arith.addf %29, %30 : vector<32x512xf32>
    %cst_22 = arith.constant 0.000000e+00 : f32
    %32 = vector.broadcast %cst_22 : f32 to vector<32x512xf32>
    %33 = arith.maximumf %31, %32 : vector<32x512xf32>
    %34 = arith.truncf %33 : vector<32x512xf32> to vector<32x512xbf16>
    %cst_23 = arith.constant dense<0.000000e+00> : vector<32x512xf32>
    %35 = tpu.matmul %2, %34, %cst_23 {dimension_numbers = #tpu.dot_dimension_numbers<[1], [0], [0], [1], [0, 0, 1, 1], [], []>} : vector<32x32xbf16>, vector<32x512xbf16>, vector<32x512xf32> -> vector<32x512xf32>
    %36 = vector.broadcast %3 : vector<32x1xf32> to vector<32x512xf32>
    %37 = arith.addf %35, %36 : vector<32x512xf32>
    %cst_24 = arith.constant 0.000000e+00 : f32
    %38 = vector.broadcast %cst_24 : f32 to vector<32x512xf32>
    %39 = arith.maximumf %37, %38 : vector<32x512xf32>
    %40 = arith.truncf %39 : vector<32x512xf32> to vector<32x512xbf16>
    %cst_25 = arith.constant dense<0.000000e+00> : vector<8x512xf32>
    %41 = tpu.matmul %4, %40, %cst_25 {dimension_numbers = #tpu.dot_dimension_numbers<[1], [0], [0], [1], [0, 0, 1, 1], [], []>} : vector<8x32xbf16>, vector<32x512xbf16>, vector<8x512xf32> -> vector<8x512xf32>
    %42 = vector.broadcast %5 : vector<8x1xf32> to vector<8x512xf32>
    %43 = arith.addf %41, %42 : vector<8x512xf32>
    %44 = arith.negf %43 : vector<8x512xf32>
    %45 = math.exp %44 : vector<8x512xf32>
    %cst_26 = arith.constant 1.000000e+00 : f32
    %46 = vector.broadcast %cst_26 : f32 to vector<8x512xf32>
    %47 = arith.addf %46, %45 : vector<8x512xf32>
    %48 = arith.divf %46, %47 : vector<8x512xf32>
    %c0_27 = arith.constant 0 : index
    %c512_28 = arith.constant 512 : index
    %49 = vector.load %arg8[%c0_27, %c512_28] : memref<8x2048xf32, #tpu.memory_space<vmem>>, vector<8x512xf32>
    tpu.vector_store %arg8[%c0_27, %c512_28], %48 {strides = array<i32>} : memref<8x2048xf32, #tpu.memory_space<vmem>>, vector<8x512xf32>,
    %c0_29 = arith.constant 0 : index
    %c1024 = arith.constant 1024 : index
    %50 = vector.load %arg1[%c0_29, %c1024] : memref<17x2048xf32, #tpu.memory_space<vmem>>, vector<17x512xf32>
    %cst_30 = arith.constant dense<0.000000e+00> : vector<32x512xf32>
    %51 = tpu.matmul %0, %50, %cst_30 {dimension_numbers = #tpu.dot_dimension_numbers<[1], [0], [0], [1], [0, 0, 1, 1], [], []>} : vector<32x17xf32>, vector<17x512xf32>, vector<32x512xf32> -> vector<32x512xf32>
    %52 = vector.broadcast %1 : vector<32x1xf32> to vector<32x512xf32>
    %53 = arith.addf %51, %52 : vector<32x512xf32>
    %cst_31 = arith.constant 0.000000e+00 : f32
    %54 = vector.broadcast %cst_31 : f32 to vector<32x512xf32>
    %55 = arith.maximumf %53, %54 : vector<32x512xf32>
    %56 = arith.truncf %55 : vector<32x512xf32> to vector<32x512xbf16>
    %cst_32 = arith.constant dense<0.000000e+00> : vector<32x512xf32>
    %57 = tpu.matmul %2, %56, %cst_32 {dimension_numbers = #tpu.dot_dimension_numbers<[1], [0], [0], [1], [0, 0, 1, 1], [], []>} : vector<32x32xbf16>, vector<32x512xbf16>, vector<32x512xf32> -> vector<32x512xf32>
    %58 = vector.broadcast %3 : vector<32x1xf32> to vector<32x512xf32>
    %59 = arith.addf %57, %58 : vector<32x512xf32>
    %cst_33 = arith.constant 0.000000e+00 : f32
    %60 = vector.broadcast %cst_33 : f32 to vector<32x512xf32>
    %61 = arith.maximumf %59, %60 : vector<32x512xf32>
    %62 = arith.truncf %61 : vector<32x512xf32> to vector<32x512xbf16>
    %cst_34 = arith.constant dense<0.000000e+00> : vector<8x512xf32>
    %63 = tpu.matmul %4, %62, %cst_34 {dimension_numbers = #tpu.dot_dimension_numbers<[1], [0], [0], [1], [0, 0, 1, 1], [], []>} : vector<8x32xbf16>, vector<32x512xbf16>, vector<8x512xf32> -> vector<8x512xf32>
    %64 = vector.broadcast %5 : vector<8x1xf32> to vector<8x512xf32>
    %65 = arith.addf %63, %64 : vector<8x512xf32>
    %66 = arith.negf %65 : vector<8x512xf32>
    %67 = math.exp %66 : vector<8x512xf32>
    %cst_35 = arith.constant 1.000000e+00 : f32
    %68 = vector.broadcast %cst_35 : f32 to vector<8x512xf32>
    %69 = arith.addf %68, %67 : vector<8x512xf32>
    %70 = arith.divf %68, %69 : vector<8x512xf32>
    %c0_36 = arith.constant 0 : index
    %c1024_37 = arith.constant 1024 : index
    %71 = vector.load %arg8[%c0_36, %c1024_37] : memref<8x2048xf32, #tpu.memory_space<vmem>>, vector<8x512xf32>
    tpu.vector_store %arg8[%c0_36, %c1024_37], %70 {strides = array<i32>} : memref<8x2048xf32, #tpu.memory_space<vmem>>, vector<8x512xf32>,
    %c0_38 = arith.constant 0 : index
    %c1536 = arith.constant 1536 : index
    %72 = vector.load %arg1[%c0_38, %c1536] : memref<17x2048xf32, #tpu.memory_space<vmem>>, vector<17x512xf32>
    %cst_39 = arith.constant dense<0.000000e+00> : vector<32x512xf32>
    %73 = tpu.matmul %0, %72, %cst_39 {dimension_numbers = #tpu.dot_dimension_numbers<[1], [0], [0], [1], [0, 0, 1, 1], [], []>} : vector<32x17xf32>, vector<17x512xf32>, vector<32x512xf32> -> vector<32x512xf32>
    %74 = vector.broadcast %1 : vector<32x1xf32> to vector<32x512xf32>
    %75 = arith.addf %73, %74 : vector<32x512xf32>
    %cst_40 = arith.constant 0.000000e+00 : f32
    %76 = vector.broadcast %cst_40 : f32 to vector<32x512xf32>
    %77 = arith.maximumf %75, %76 : vector<32x512xf32>
    %78 = arith.truncf %77 : vector<32x512xf32> to vector<32x512xbf16>
    %cst_41 = arith.constant dense<0.000000e+00> : vector<32x512xf32>
    %79 = tpu.matmul %2, %78, %cst_41 {dimension_numbers = #tpu.dot_dimension_numbers<[1], [0], [0], [1], [0, 0, 1, 1], [], []>} : vector<32x32xbf16>, vector<32x512xbf16>, vector<32x512xf32> -> vector<32x512xf32>
    %80 = vector.broadcast %3 : vector<32x1xf32> to vector<32x512xf32>
    %81 = arith.addf %79, %80 : vector<32x512xf32>
    %cst_42 = arith.constant 0.000000e+00 : f32
    %82 = vector.broadcast %cst_42 : f32 to vector<32x512xf32>
    %83 = arith.maximumf %81, %82 : vector<32x512xf32>
    %84 = arith.truncf %83 : vector<32x512xf32> to vector<32x512xbf16>
    %cst_43 = arith.constant dense<0.000000e+00> : vector<8x512xf32>
    %85 = tpu.matmul %4, %84, %cst_43 {dimension_numbers = #tpu.dot_dimension_numbers<[1], [0], [0], [1], [0, 0, 1, 1], [], []>} : vector<8x32xbf16>, vector<32x512xbf16>, vector<8x512xf32> -> vector<8x512xf32>
    %86 = vector.broadcast %5 : vector<8x1xf32> to vector<8x512xf32>
    %87 = arith.addf %85, %86 : vector<8x512xf32>
    %88 = arith.negf %87 : vector<8x512xf32>
    %89 = math.exp %88 : vector<8x512xf32>
    %cst_44 = arith.constant 1.000000e+00 : f32
    %90 = vector.broadcast %cst_44 : f32 to vector<8x512xf32>
    %91 = arith.addf %90, %89 : vector<8x512xf32>
    %92 = arith.divf %90, %91 : vector<8x512xf32>
    %c0_45 = arith.constant 0 : index
    %c1536_46 = arith.constant 1536 : index
    %93 = vector.load %arg8[%c0_45, %c1536_46] : memref<8x2048xf32, #tpu.memory_space<vmem>>, vector<8x512xf32>
    tpu.vector_store %arg8[%c0_45, %c1536_46], %92 {strides = array<i32>} : memref<8x2048xf32, #tpu.memory_space<vmem>>, vector<8x512xf32>,
    return
  }
  func.func @transform_0(%arg0: i32) -> (i32, i32) {
    %c0_i32 = arith.constant 0 : i32
    %c0_i32_0 = arith.constant 0 : i32
    return %c0_i32, %arg0 : i32, i32
  }
  func.func @transform_1(%arg0: i32) -> (i32, i32) {
    %c0_i32 = arith.constant 0 : i32
    %c0_i32_0 = arith.constant 0 : i32
    %c0_i32_1 = arith.constant 0 : i32
    return %c0_i32, %c0_i32_0 : i32, i32
  }
  func.func @transform_2(%arg0: i32) -> (i32, i32) {
    %c0_i32 = arith.constant 0 : i32
    %c0_i32_0 = arith.constant 0 : i32
    %c0_i32_1 = arith.constant 0 : i32
    return %c0_i32, %c0_i32_0 : i32, i32
  }
  func.func @transform_3(%arg0: i32) -> (i32, i32) {
    %c0_i32 = arith.constant 0 : i32
    %c0_i32_0 = arith.constant 0 : i32
    %c0_i32_1 = arith.constant 0 : i32
    return %c0_i32, %c0_i32_0 : i32, i32
  }
  func.func @transform_4(%arg0: i32) -> (i32, i32) {
    %c0_i32 = arith.constant 0 : i32
    %c0_i32_0 = arith.constant 0 : i32
    %c0_i32_1 = arith.constant 0 : i32
    return %c0_i32, %c0_i32_0 : i32, i32
  }
  func.func @transform_5(%arg0: i32) -> (i32, i32) {
    %c0_i32 = arith.constant 0 : i32
    %c0_i32_0 = arith.constant 0 : i32
    %c0_i32_1 = arith.constant 0 : i32
    return %c0_i32, %c0_i32_0 : i32, i32
  }
  func.func @transform_6(%arg0: i32) -> (i32, i32) {
    %c0_i32 = arith.constant 0 : i32
    %c0_i32_0 = arith.constant 0 : i32
    %c0_i32_1 = arith.constant 0 : i32
    return %c0_i32, %c0_i32_0 : i32, i32
  }
  func.func @transform_7(%arg0: i32) -> (i32, i32) {
    %c0_i32 = arith.constant 0 : i32
    %c0_i32_0 = arith.constant 0 : i32
    return %c0_i32, %arg0 : i32, i32
  }
}

</mosaic_0001>

<bundles_post_ra>
// kernel: rendering_network_forward.1
= control target key start
LH: loop header
LB: loop body
LE: loop exit
PB: predicated region body
PF: predicated region fallthrough
CT: control target
= control target key end

     0   :  { %s2471_s24 = smov 0   ;;  %s2473_s25 = smov 0   ;;  %s3179_s0 = inlined_call_operand.vmem [shape: f32[17,4096], index: 0, kind: input, shape index: {}]   ;;  %s3180_s1 = inlined_call_operand.vmem [shape: f32[32,17], index: 1, kind: input, shape index: {}]   ;;  %s3181_s2 = inlined_call_operand.vmem [shape: f32[32,1], index: 2, kind: input, shape index: {}]   ;;  %s3182_s3 = inlined_call_operand.vmem [shape: bf16[32,32], index: 3, kind: input, shape index: {}]   ;;  %s3183_s4 = inlined_call_operand.vmem [shape: f32[32,1], index: 4, kind: input, shape index: {}]   ;;  %s3184_s5 = inlined_call_operand.vmem [shape: bf16[8,32], index: 5, kind: input, shape index: {}]   ;;  %s3185_s6 = inlined_call_operand.vmem [shape: f32[8,1], index: 6, kind: input, shape index: {}]   ;;  %s3186_s7 = inlined_call_operand.vmem [shape: f32[8,4096], index: 7, kind: output, shape index: {}]  }
   0x1   :  { %s2475_s26 = smov 0  }
   0x2 LB: > { %s2139_s27 = sadd.s32 4294967295, %s2428_s26   ;;  %s2488_s28 = sadd.s32 1, %s2428_s26   ;;  %s2428_s26 = sphi %s2475_s26, %s3189_s26   ;;  %s2424_s25 = sphi %s2473_s25, %s3188_s25   ;;  %s2420_s24 = sphi %s2471_s24, %s3187_s24  }
   0x3   : > { %s21_s29 = ssub.s32 %s2428_s26, %s2488_s28  ;;  %s24_s30 = sadd.s32 1, %s2424_s25 }
   0x4   : > { %p22_p0 = scmp.eq.s32.totalorder %s21_s29, 0  ;;  %p31_p1 = scmp.ne.s32.totalorder %s2424_s25, %s2420_s24 }
   0x5   : > { %p32_p2 = scmp.eq.s32.totalorder %s2428_s26, 0  ;;  %p2142_p4 = scmp.ge.s32.totalorder %s2428_s26, 2 }
   0x6   : > { %s2497_s8 = scalar_select %p22_p0, %s2424_s25, %s24_s30  }
   0x7   : > { %p33_p3 = por %p32_p2, %p31_p1  ;;  %227 = sbr.rel (%p2142_p4) target bundleno = 64 (0x40), region = 40 }
   0xc   : > { %230 = sbr.rel (!%p33_p3) target bundleno = 64 (0x40), region = 44  ;;  %s232_s9 = sand.u32 (%p33_p3), 1, %s2424_s25  }
   0xd   : > { %s2302_s10 = sshll.u32 (%p33_p3), %s2428_s26, 7  ;;  %s2305_s11 = smul.u32 (%p33_p3), 384, %s232_s9 }
   0xe   : > { %s2505_s14 = scalar_lea.vmem (%p33_p3), %s3179_s0, %s2302_s10 }
   0xf   : > { %v250_v0 = vld [vmem:[%s2505_s14] sm:$0xff] (%p33_p3)  ;;  %v252_v1 = vld [vmem:[%s2505_s14 + $0x8] sm:$0xff] (%p33_p3)  ;;  %v254_v2 = vld [vmem:[%s2505_s14 + $0x10] sm:$0xff] (%p33_p3)  ;;  %s2510_s15 = scalar_lea.vmem (%p33_p3), [#allocation2], %s2305_s11 }
  0x10   : > { %251 = vst [vmem:[%s2510_s15] sm:$0xff] (%p33_p3), %v250_v0  ;;  %v256_v3 = vld [vmem:[%s2505_s14 + $0x18] sm:$0xff] (%p33_p3)  ;;  %v258_v4 = vld [vmem:[%s2505_s14 + $0x20] sm:$0xff] (%p33_p3)  ;;  %v260_v5 = vld [vmem:[%s2505_s14 + $0x28] sm:$0xff] (%p33_p3) }
  0x11   : > { %253 = vst [vmem:[%s2510_s15 + $0x8] sm:$0xff] %v252_v1  ;;  %v262_v6 = vld [vmem:[%s2505_s14 + $0x30] sm:$0xff]  ;;  %v264_v7 = vld [vmem:[%s2505_s14 + $0x38] sm:$0xff]  ;;  %v266_v8 = vld [vmem:[%s2505_s14 + $0x40] sm:$0xff] }
  0x12   : > { %255 = vst [vmem:[%s2510_s15 + $0x10] sm:$0xff] %v254_v2  ;;  %v268_v9 = vld [vmem:[%s2505_s14 + $0x48] sm:$0xff]  ;;  %v270_v10 = vld [vmem:[%s2505_s14 + $0x50] sm:$0xff]  ;;  %v272_v11 = vld [vmem:[%s2505_s14 + $0x58] sm:$0xff] }
  0x13   : > { %257 = vst [vmem:[%s2510_s15 + $0x18] sm:$0xff] %v256_v3  ;;  %v274_v12 = vld [vmem:[%s2505_s14 + $0x60] sm:$0xff]  ;;  %v276_v13 = vld [vmem:[%s2505_s14 + $0x68] sm:$0xff]  ;;  %v278_v14 = vld [vmem:[%s2505_s14 + $0x70] sm:$0xff] }
  0x14   : > { %259 = vst [vmem:[%s2510_s15 + $0x20] sm:$0xff] %v258_v4  ;;  %v280_v15 = vld [vmem:[%s2505_s14 + $0x78] sm:$0xff]  ;;  %v282_v16 = vld [vmem:[%s2505_s14 + $0x100] sm:$0xff]  ;;  %v284_v17 = vld [vmem:[%s2505_s14 + $0x108] sm:$0xff] }
  0x15   : > { %261 = vst [vmem:[%s2510_s15 + $0x28] sm:$0xff] %v260_v5  ;;  %v286_v18 = vld [vmem:[%s2505_s14 + $0x110] sm:$0xff]  ;;  %v288_v19 = vld [vmem:[%s2505_s14 + $0x118] sm:$0xff]  ;;  %v290_v20 = vld [vmem:[%s2505_s14 + $0x120] sm:$0xff] }
  0x16   : > { %263 = vst [vmem:[%s2510_s15 + $0x30] sm:$0xff] %v262_v6  ;;  %v292_v21 = vld [vmem:[%s2505_s14 + $0x128] sm:$0xff]  ;;  %v294_v22 = vld [vmem:[%s2505_s14 + $0x130] sm:$0xff]  ;;  %v296_v23 = vld [vmem:[%s2505_s14 + $0x138] sm:$0xff] }
  0x17   : > { %265 = vst [vmem:[%s2510_s15 + $0x38] sm:$0xff] %v264_v7  ;;  %v298_v24 = vld [vmem:[%s2505_s14 + $0x140] sm:$0xff]  ;;  %v300_v25 = vld [vmem:[%s2505_s14 + $0x148] sm:$0xff]  ;;  %v302_v26 = vld [vmem:[%s2505_s14 + $0x150] sm:$0xff] }
  0x18   : > { %267 = vst [vmem:[%s2510_s15 + $0x40] sm:$0xff] %v266_v8  ;;  %v304_v27 = vld [vmem:[%s2505_s14 + $0x158] sm:$0xff]  ;;  %v306_v28 = vld [vmem:[%s2505_s14 + $0x160] sm:$0xff]  ;;  %v308_v29 = vld [vmem:[%s2505_s14 + $0x168] sm:$0xff] }
  0x19   : > { %269 = vst [vmem:[%s2510_s15 + $0x48] sm:$0xff] %v268_v9  ;;  %v310_v30 = vld [vmem:[%s2505_s14 + $0x170] sm:$0xff]  ;;  %v312_v31 = vld [vmem:[%s2505_s14 + $0x178] sm:$0xff]  ;;  %v314_v32 = vld [vmem:[%s2505_s14 + $0x200] sm:$0xff] }
  0x1a   : > { %271 = vst [vmem:[%s2510_s15 + $0x50] sm:$0xff] %v270_v10  ;;  %v316_v33 = vld [vmem:[%s2505_s14 + $0x208] sm:$0xff]  ;;  %v318_v34 = vld [vmem:[%s2505_s14 + $0x210] sm:$0xff]  ;;  %v320_v35 = vld [vmem:[%s2505_s14 + $0x218] sm:$0xff] }
  0x1b   : > { %273 = vst [vmem:[%s2510_s15 + $0x58] sm:$0xff] %v272_v11  ;;  %v322_v36 = vld [vmem:[%s2505_s14 + $0x220] sm:$0xff]  ;;  %v324_v37 = vld [vmem:[%s2505_s14 + $0x228] sm:$0xff]  ;;  %v326_v38 = vld [vmem:[%s2505_s14 + $0x230] sm:$0xff] }
  0x1c   : > { %275 = vst [vmem:[%s2510_s15 + $0x60] sm:$0xff] %v274_v12  ;;  %v328_v39 = vld [vmem:[%s2505_s14 + $0x238] sm:$0xff]  ;;  %v330_v40 = vld [vmem:[%s2505_s14 + $0x240] sm:$0xff]  ;;  %v332_v41 = vld [vmem:[%s2505_s14 + $0x248] sm:$0xff] }
  0x1d   : > { %277 = vst [vmem:[%s2510_s15 + $0x68] sm:$0xff] %v276_v13  ;;  %v334_v42 = vld [vmem:[%s2505_s14 + $0x250] sm:$0xff]  ;;  %v336_v43 = vld [vmem:[%s2505_s14 + $0x258] sm:$0xff]  ;;  %v338_v44 = vld [vmem:[%s2505_s14 + $0x260] sm:$0xff] }
  0x1e   : > { %279 = vst [vmem:[%s2510_s15 + $0x70] sm:$0xff] %v278_v14  ;;  %v340_v45 = vld [vmem:[%s2505_s14 + $0x268] sm:$0xff]  ;;  %v342_v46 = vld [vmem:[%s2505_s14 + $0x270] sm:$0xff]  ;;  %v344_v47 = vld [vmem:[%s2505_s14 + $0x278] sm:$0xff] }
  0x1f   : > { %281 = vst [vmem:[%s2510_s15 + $0x78] sm:$0xff] %v280_v15 }
  0x20   : > { %283 = vst [vmem:[%s2510_s15 + $0x80] sm:$0xff] %v282_v16 }
  0x21   : > { %285 = vst [vmem:[%s2510_s15 + $0x88] sm:$0xff] %v284_v17 }
  0x22   : > { %287 = vst [vmem:[%s2510_s15 + $0x90] sm:$0xff] %v286_v18 }
  0x23   : > { %289 = vst [vmem:[%s2510_s15 + $0x98] sm:$0xff] %v288_v19 }
  0x24   : > { %291 = vst [vmem:[%s2510_s15 + $0xa0] sm:$0xff] %v290_v20 }
  0x25   : > { %293 = vst [vmem:[%s2510_s15 + $0xa8] sm:$0xff] %v292_v21 }
  0x26   : > { %295 = vst [vmem:[%s2510_s15 + $0xb0] sm:$0xff] %v294_v22 }
  0x27   : > { %297 = vst [vmem:[%s2510_s15 + $0xb8] sm:$0xff] %v296_v23 }
  0x28   : > { %299 = vst [vmem:[%s2510_s15 + $0xc0] sm:$0xff] %v298_v24 }
  0x29   : > { %301 = vst [vmem:[%s2510_s15 + $0xc8] sm:$0xff] %v300_v25 }
  0x2a   : > { %303 = vst [vmem:[%s2510_s15 + $0xd0] sm:$0xff] %v302_v26 }
  0x2b   : > { %305 = vst [vmem:[%s2510_s15 + $0xd8] sm:$0xff] %v304_v27 }
  0x2c   : > { %307 = vst [vmem:[%s2510_s15 + $0xe0] sm:$0xff] %v306_v28 }
  0x2d   : > { %309 = vst [vmem:[%s2510_s15 + $0xe8] sm:$0xff] %v308_v29 }
  0x2e   : > { %311 = vst [vmem:[%s2510_s15 + $0xf0] sm:$0xff] %v310_v30 }
  0x2f   : > { %313 = vst [vmem:[%s2510_s15 + $0xf8] sm:$0xff] %v312_v31 }
  0x30   : > { %315 = vst [vmem:[%s2510_s15 + $0x100] sm:$0xff] %v314_v32 }
  0x31   : > { %317 = vst [vmem:[%s2510_s15 + $0x108] sm:$0xff] %v316_v33 }
  0x32   : > { %319 = vst [vmem:[%s2510_s15 + $0x110] sm:$0xff] %v318_v34 }
  0x33   : > { %321 = vst [vmem:[%s2510_s15 + $0x118] sm:$0xff] %v320_v35 }
  0x34   : > { %323 = vst [vmem:[%s2510_s15 + $0x120] sm:$0xff] %v322_v36 }
  0x35   : > { %325 = vst [vmem:[%s2510_s15 + $0x128] sm:$0xff] %v324_v37 }
  0x36   : > { %327 = vst [vmem:[%s2510_s15 + $0x130] sm:$0xff] %v326_v38 }
  0x37   : > { %329 = vst [vmem:[%s2510_s15 + $0x138] sm:$0xff] %v328_v39 }
  0x38   : > { %331 = vst [vmem:[%s2510_s15 + $0x140] sm:$0xff] %v330_v40 }
  0x39   : > { %333 = vst [vmem:[%s2510_s15 + $0x148] sm:$0xff] %v332_v41 }
  0x3a   : > { %335 = vst [vmem:[%s2510_s15 + $0x150] sm:$0xff] %v334_v42 }
  0x3b   : > { %337 = vst [vmem:[%s2510_s15 + $0x158] sm:$0xff] %v336_v43 }
  0x3c   : > { %339 = vst [vmem:[%s2510_s15 + $0x160] sm:$0xff] %v338_v44 }
  0x3d   : > { %341 = vst [vmem:[%s2510_s15 + $0x168] sm:$0xff] %v340_v45 }
  0x3e   : > { %343 = vst [vmem:[%s2510_s15 + $0x170] sm:$0xff] %v342_v46 }
  0x3f   : > { %345 = vst [vmem:[%s2510_s15 + $0x178] sm:$0xff] %v344_v47 }
  0x40 PF: > { %p2145_p5 = scmp.ge.s32.totalorder %s2428_s26, 1  ;;  %p350_p6 = scmp.lt.s32.totalorder %s2428_s26, 3 }
  0x42   : > { %p351_p7 = pnand %p2145_p5, %p350_p6 }
  0x43   : > { %s357_s16 = sand.u32 (!%p351_p7), 1, %s2420_s24  }
  0x44   : > { %354 = sbr.rel (%p351_p7) target bundleno = 1647 (0x66f), region = 67 }
  0x45   : > { %s2306_s17 = smul.u32 (!%p351_p7), 384, %s357_s16  ;;  %s2146_s16 = sshll.u32 (!%p351_p7), %s2139_s27, 4 }
  0x46   : > { %p390_p8 = scmp.lt.s32.totalorder (!%p351_p7), %s2146_s16, 31 }
  0x47   : > { %s2614_s22 = scalar_lea.vmem (!%p351_p7), [#allocation2], %s2306_s17 }
  0x49   : > { %v2430_v48 = vmov 0   ;;  %v402_v49 = vld [vmem:[%s3181_s2 + $0x10] sm:$0xff]  ;;  %v400_v50 = vld [vmem:[%s3181_s2] sm:$0xff]  ;;  %vm459_vm0 = vcmask 1040384   ;;  %v423_v52 = vld [vmem:[%s2614_s22 + $0x108] sm:$0x1] }
  0x4a   : > { %2333 = vset.pattern.permute.xlu1 %v2430_v48  ;;  %2332 = vset.pattern.permute.xlu0 %v2430_v48  ;;  %v422_v51 = vld [vmem:[%s2614_s22 + $0x100] sm:$0x1]  ;;  %v424_v53 = vld [vmem:[%s2614_s22 + $0x110] sm:$0x1]  ;;  %v425_v54 = vld [vmem:[%s2614_s22 + $0x118] sm:$0x1] }
  0x4b   : > { %438 = vperm.xlu0 %2332, %v402_v49   ;;  %428 = vperm.xlu1 %2333, %v400_v50   ;;  %v418_v55 = vld [vmem:[%s2614_s22 + $0x80] sm:$0xff]  ;;  %v419_v56 = vld [vmem:[%s2614_s22 + $0x88] sm:$0xff]  ;;  %v420_v57 = vld [vmem:[%s2614_s22 + $0x90] sm:$0xff]  ;;  %vm446_vm1 = vcmask 138240   ;;  %vm642_vm2 = vcmask 261120   ;;  %s3191_s16 = smov (!%p390_p8, %s2146_s16), 31 }
  0x4c   : > { %2334 = vset.pattern.permute.xlu2 %v2430_v48  ;;  %2148 = vmatpush.msk.msra.mxu0 %vm459_vm0, %v422_v51  ;;  %v421_v58 = vld [vmem:[%s2614_s22 + $0x98] sm:$0xff]  ;;  %v414_v59 = vld [vmem:[%s2614_s22] sm:$0xff]  ;;  %v415_v60 = vld [vmem:[%s2614_s22 + $0x8] sm:$0xff]  ;;  %s2147_s26 = sshll.u32 %s3191_s16, 3 }
  0x4d   : > { %2153 = vmatpush.msk.msra.mxu1 %vm459_vm0, %v423_v52  ;;  %2158 = vmatpush.msk.msra.mxu2 %vm459_vm0, %v424_v53  ;;  %v416_v61 = vld [vmem:[%s2614_s22 + $0x10] sm:$0xff]  ;;  %v417_v62 = vld [vmem:[%s2614_s22 + $0x18] sm:$0xff]  ;;  %v2635_v63 = vld [vmem:[%s3180_s1] sm:$0xff]  ;;  %s2855_s18 = scalar_lea.vmem %s3186_s7, %s2147_s26 }
  0x4e   : > { %2163 = vmatpush.msk.msra.mxu3 %vm459_vm0, %v425_v54  ;;  %486 = vmatpush.msra.mxu0 %v418_v55  ;;  %v403_v0 = vld [vmem:[%s3181_s2 + $0x18] sm:$0xff]  ;;  %v401_v1 = vld [vmem:[%s3181_s2 + $0x8] sm:$0xff]  ;;  %v408_v3 = vld [vmem:[%s3183_s4] sm:$0xff] }
  0x4f   : > { %515 = vmatpush.msra.mxu1 %v419_v56  ;;  %544 = vmatpush.msra.mxu2 %v420_v57  ;;  %v2654_v2 = vld [vmem:[%s3180_s1 + $0x8] sm:$0xff]  ;;  %v2673_v5 = vld [vmem:[%s3180_s1 + $0x10] sm:$0xff]  ;;  %v2686_v6 = vld [vmem:[%s3180_s1 + $0x18] sm:$0xff] }
  0x50   : > { %573 = vmatpush.msra.mxu3 %v421_v58  ;;  %487 = vmatpush.msra.mxu0 %v414_v59  ;;  %v409_v4 = vld [vmem:[%s3183_s4 + $0x8] sm:$0xff]  ;;  %v410_v43 = vld [vmem:[%s3183_s4 + $0x10] sm:$0xff] }
  0x51   : > { %516 = vmatpush.msra.mxu1 %v415_v60  ;;  %545 = vmatpush.msra.mxu2 %v416_v61  ;;  %v2726_v60 = vld [vmem:[%s3182_s3] sm:$0xff] }
  0x52   : > { %574 = vmatpush.msra.mxu3 %v417_v62  ;;  %2149 = vmatmul.msk.f32.vlgmr.msra.gmra.mxu0 %vm446_vm1, %v2635_v63 }
  0x53   : > { %2154 = vmatmul.msk.f32.vlgmr.msra.gmra.mxu1 %vm446_vm1, %v2635_v63  ;;  %2159 = vmatmul.msk.f32.vlgmr.msra.gmra.mxu2 %vm446_vm1, %v2635_v63 }
  0x54   : > { %2164 = vmatmul.msk.f32.vlgmr.msra.gmra.mxu3 %vm446_vm1, %v2635_v63  ;;  %443 = vperm.xlu0 %2332, %v403_v0  }
  0x55   : > { %433 = vperm.xlu1 %2333, %v401_v1   ;;  %624 = vperm.xlu2 %2334, %v410_v43  }
  0x5a   : > { %2150 = vmatmul.msk.f32.gmra.mxu0 %vm446_vm1, %v2654_v2 }
  0x5b   : > { %2155 = vmatmul.msk.f32.gmra.mxu1 %vm446_vm1, %v2654_v2  ;;  %2160 = vmatmul.msk.f32.gmra.mxu2 %vm446_vm1, %v2654_v2 }
  0x5c   : > { %2165 = vmatmul.msk.f32.gmra.mxu3 %vm446_vm1, %v2654_v2  ;;  %614 = vperm.xlu0 %2332, %v408_v3   ;;  %v411_v3 = vld [vmem:[%s3183_s4 + $0x18] sm:$0xff] }
  0x5d   : > { %619 = vperm.xlu1 %2333, %v409_v4   ;;  %629 = vperm.xlu2 %2334, %v411_v3  }
  0x62   : > { %2151 = vmatmul.msk.f32.gmra.mxu0 %vm446_vm1, %v2673_v5 }
  0x63   : > { %2156 = vmatmul.msk.f32.gmra.mxu1 %vm446_vm1, %v2673_v5  ;;  %2161 = vmatmul.msk.f32.gmra.mxu2 %vm446_vm1, %v2673_v5 }
  0x64   : > { %2166 = vmatmul.msk.f32.gmra.mxu3 %vm446_vm1, %v2673_v5 }
  0x6a   : > { %2152 = vmatmul.msk.f32.gmra.mxu0 %vm446_vm1, %v2686_v6 }
  0x6b   : > { %2157 = vmatmul.msk.f32.gmra.mxu1 %vm446_vm1, %v2686_v6  ;;  %2162 = vmatmul.msk.f32.gmra.mxu2 %vm446_vm1, %v2686_v6 }
  0x6c   : > { %2167 = vmatmul.msk.f32.gmra.mxu3 %vm446_vm1, %v2686_v6 }
  0xbd   : > { %v2696_v13 = vpop.permute.xlu0 %438  ;;  %v2698_v14 = vpop.permute.xlu1 %428 }
  0xc6   : > { %v2700_v19 = vpop.permute.xlu0 %443 }
  0xc7   : > { %v2702_v20 = vpop.permute.xlu1 %433 }
  0xcf   : > { %v489_v7 = vpop.f32.mrf.mxu0 }
  0xd0   : > { %v518_v8 = vpop.f32.mrf.mxu1  ;;  %v490_v27 = vadd.f32 %v489_v7, %v2698_v14 }
  0xd1   : > { %v519_v28 = vadd.f32 %v518_v8, %v2698_v14 }
  0xd2   : > { %v588_v37 = vmax.f32 %v490_v27, 0.0 }
  0xd3   : > { %v589_v38 = vmax.f32 %v519_v28, 0.0 }
  0xd6   : > { %v547_v9 = vpop.f32.mrf.mxu2 }
  0xd7   : > { %v576_v10 = vpop.f32.mrf.mxu3  ;;  %v492_v11 = vpop.f32.mrf.mxu0  ;;  %v548_v52 = vadd.f32 %v547_v9, %v2698_v14 }
  0xd8   : > { %v521_v12 = vpop.f32.mrf.mxu1  ;;  %v493_v31 = vadd.f32 %v492_v11, %v2702_v20  ;;  %v577_v53 = vadd.f32 %v576_v10, %v2698_v14  ;;  %v413_v10 = vld [vmem:[%s3185_s6] sm:$0xff]  ;;  %v2745_v11 = vld [vmem:[%s3182_s3 + $0x8] sm:$0xff] }
  0xd9   : > { %v522_v32 = vadd.f32 %v521_v12, %v2702_v20  ;;  %v590_v4 = vmax.f32 %v548_v52, 0.0  ;;  %751 = vperm.xlu2 %2334, %v413_v10   ;;  %v889_v10 = vld [vmem:[%s2614_s22 + $0x20] sm:$0xff] }
  0xda   : > { %v592_v41 = vmax.f32 %v493_v31, 0.0  ;;  %v591_v7 = vmax.f32 %v577_v53, 0.0 }
  0xdb   : > { %v593_v42 = vmax.f32 %v522_v32, 0.0 }
  0xdc   : > { %v604_v54 = vpack.c.bf16 %v592_v41, %v588_v37 }
  0xdd   : > { %v605_v55 = vpack.c.bf16 %v593_v42, %v589_v38 }
  0xde   : > { %v550_v15 = vpop.f32.mrf.mxu2 }
  0xdf   : > { %v579_v16 = vpop.f32.mrf.mxu3  ;;  %v495_v17 = vpop.f32.mrf.mxu0  ;;  %v551_v48 = vadd.f32 %v550_v15, %v2702_v20 }
  0xe0   : > { %v524_v18 = vpop.f32.mrf.mxu1  ;;  %v496_v21 = vadd.f32 %v495_v17, %v2696_v13  ;;  %v580_v49 = vadd.f32 %v579_v16, %v2702_v20 }
  0xe1   : > { %v525_v22 = vadd.f32 %v524_v18, %v2696_v13  ;;  %v594_v61 = vmax.f32 %v551_v48, 0.0 }
  0xe2   : > { %v596_v33 = vmax.f32 %v496_v21, 0.0  ;;  %v595_v62 = vmax.f32 %v580_v49, 0.0 }
  0xe3   : > { %v597_v34 = vmax.f32 %v525_v22, 0.0  ;;  %v606_v8 = vpack.c.bf16 %v594_v61, %v590_v4  ;;  %v2755_v22 = vpop.permute.xlu2 %624 }
  0xe4   : > { %v607_v9 = vpack.c.bf16 %v595_v62, %v591_v7  ;;  %v893_v62 = vld [vmem:[%s2614_s22 + $0xa0] sm:$0xff] }
  0xe6   : > { %v553_v23 = vpop.f32.mrf.mxu2 }
  0xe7   : > { %v582_v24 = vpop.f32.mrf.mxu3  ;;  %v498_v25 = vpop.f32.mrf.mxu0  ;;  %v554_v44 = vadd.f32 %v553_v23, %v2696_v13 }
  0xe8   : > { %v527_v26 = vpop.f32.mrf.mxu1  ;;  %v499_v29 = vadd.f32 %v498_v25, %v2700_v19  ;;  %v583_v45 = vadd.f32 %v582_v24, %v2696_v13 }
  0xe9   : > { %v528_v30 = vadd.f32 %v527_v26, %v2700_v19  ;;  %v598_v56 = vmax.f32 %v554_v44, 0.0 }
  0xea   : > { %v600_v35 = vmax.f32 %v499_v29, 0.0  ;;  %v599_v57 = vmax.f32 %v583_v45, 0.0  ;;  %v2759_v29 = vpop.permute.xlu1 %619 }
  0xeb   : > { %v601_v36 = vmax.f32 %v528_v30, 0.0  ;;  %v2761_v30 = vpop.permute.xlu2 %629 }
  0xec   : > { %v608_v39 = vpack.c.bf16 %v600_v35, %v596_v33 }
  0xed   : > { %v609_v40 = vpack.c.bf16 %v601_v36, %v597_v34 }
  0xee   : > { %v556_v46 = vpop.f32.mrf.mxu2  ;;  %655 = vmatpush.bf16.msrb.mxu0 %v608_v39  ;;  %v2767_v39 = vpop.permute.xlu0 %614 }
  0xef   : > { %v585_v47 = vpop.f32.mrf.mxu3  ;;  %674 = vmatpush.bf16.msrb.mxu1 %v609_v40  ;;  %v557_v50 = vadd.f32 %v556_v46, %v2700_v19 }
  0xf0   : > { %v586_v51 = vadd.f32 %v585_v47, %v2700_v19 }
  0xf1   : > { %v602_v58 = vmax.f32 %v557_v50, 0.0 }
  0xf2   : > { %v603_v59 = vmax.f32 %v586_v51, 0.0  ;;  %656 = vmatpush.bf16.msrb.mxu0 %v604_v54  ;;  %v897_v54 = vld [vmem:[%s2614_s22 + $0x120] sm:$0x1] }
  0xf3   : > { %675 = vmatpush.bf16.msrb.mxu1 %v605_v55  ;;  %v610_v0 = vpack.c.bf16 %v602_v58, %v598_v56  ;;  %v898_v55 = vld [vmem:[%s2614_s22 + $0x128] sm:$0x1]  ;;  %v2778_v58 = vld [vmem:[%s3184_s5] sm:$0xf] }
  0xf4   : > { %v611_v1 = vpack.c.bf16 %v603_v59, %v599_v57 }
  0xf5   : > { %693 = vmatpush.bf16.msrb.mxu2 %v610_v0  ;;  %2176 = vmatmul.msk.bf16.vlgmr.msrb.gmra.mxu0 %vm642_vm2, %v2726_v60  ;;  %v894_v0 = vld [vmem:[%s2614_s22 + $0xa8] sm:$0xff] }
  0xf6   : > { %712 = vmatpush.bf16.msrb.mxu3 %v611_v1  ;;  %2178 = vmatmul.msk.bf16.vlgmr.msrb.gmra.mxu1 %vm642_vm2, %v2726_v60 }
  0xf9   : > { %694 = vmatpush.bf16.msrb.mxu2 %v606_v8 }
  0xfa   : > { %713 = vmatpush.bf16.msrb.mxu3 %v607_v9 }
  0xfc   : > { %2180 = vmatmul.msk.bf16.vlgmr.msrb.gmra.mxu2 %vm642_vm2, %v2726_v60 }
  0xfd   : > { %2182 = vmatmul.msk.bf16.vlgmr.msrb.gmra.mxu3 %vm642_vm2, %v2726_v60 }
 0x105   : > { %2177 = vmatmul.msk.bf16.gmra.mxu0 %vm642_vm2, %v2745_v11 }
 0x106   : > { %2179 = vmatmul.msk.bf16.gmra.mxu1 %vm642_vm2, %v2745_v11 }
 0x10c   : > { %2181 = vmatmul.msk.bf16.gmra.mxu2 %vm642_vm2, %v2745_v11 }
 0x10d   : > { %2183 = vmatmul.msk.bf16.gmra.mxu3 %vm642_vm2, %v2745_v11 }
 0x172   : > { %v658_v12 = vpop.f32.mrf.mxu0 }
 0x173   : > { %v677_v15 = vpop.f32.mrf.mxu1  ;;  %v659_v40 = vadd.f32 %v658_v12, %v2767_v39  ;;  %v890_v12 = vld [vmem:[%s2614_s22 + $0x28] sm:$0xff] }
 0x174   : > { %v678_v41 = vadd.f32 %v677_v15, %v2767_v39 }
 0x175   : > { %v725_v50 = vmax.f32 %v659_v40, 0.0 }
 0x176   : > { %v726_v51 = vmax.f32 %v678_v41, 0.0 }
 0x17a   : > { %v660_v16 = vpop.f32.mrf.mxu0 }
 0x17b   : > { %v679_v17 = vpop.f32.mrf.mxu1  ;;  %v661_v31 = vadd.f32 %v660_v16, %v2759_v29 }
 0x17c   : > { %v680_v32 = vadd.f32 %v679_v17, %v2759_v29 }
 0x17d   : > { %v729_v46 = vmax.f32 %v661_v31, 0.0 }
 0x17e   : > { %v730_v47 = vmax.f32 %v680_v32, 0.0  ;;  %v899_v32 = vld [vmem:[%s2614_s22 + $0x130] sm:$0x1] }
 0x17f   : > { %v696_v18 = vpop.f32.mrf.mxu2  ;;  %v741_v52 = vpack.c.bf16 %v729_v46, %v725_v50 }
 0x180   : > { %v715_v21 = vpop.f32.mrf.mxu3  ;;  %v742_v53 = vpack.c.bf16 %v730_v47, %v726_v51  ;;  %v697_v8 = vadd.f32 %v696_v18, %v2767_v39 }
 0x181   : > { %v716_v9 = vadd.f32 %v715_v21, %v2767_v39 }
 0x182   : > { %v663_v23 = vpop.f32.mrf.mxu0 }
 0x183   : > { %v682_v24 = vpop.f32.mrf.mxu1  ;;  %v664_v27 = vadd.f32 %v663_v23, %v2755_v22 }
 0x184   : > { %v683_v28 = vadd.f32 %v682_v24, %v2755_v22 }
 0x185   : > { %v733_v35 = vmax.f32 %v664_v27, 0.0  ;;  %v728_v27 = vmax.f32 %v716_v9, 0.0 }
 0x186   : > { %v734_v36 = vmax.f32 %v683_v28, 0.0 }
 0x187   : > { %v698_v25 = vpop.f32.mrf.mxu2 }
 0x188   : > { %v717_v26 = vpop.f32.mrf.mxu3  ;;  %v699_v1 = vadd.f32 %v698_v25, %v2759_v29 }
 0x189   : > { %v718_v3 = vadd.f32 %v717_v26, %v2759_v29  ;;  %v727_v26 = vmax.f32 %v697_v8, 0.0 }
 0x18a   : > { %v665_v33 = vpop.f32.mrf.mxu0  ;;  %v731_v24 = vmax.f32 %v699_v1, 0.0 }
 0x18b   : > { %v684_v34 = vpop.f32.mrf.mxu1  ;;  %v666_v37 = vadd.f32 %v665_v33, %v2761_v30  ;;  %v732_v18 = vmax.f32 %v718_v3, 0.0  ;;  %v900_v33 = vld [vmem:[%s2614_s22 + $0x138] sm:$0x1] }
 0x18c   : > { %v685_v38 = vadd.f32 %v684_v34, %v2761_v30  ;;  %v743_v28 = vpack.c.bf16 %v731_v24, %v727_v26  ;;  %v895_v34 = vld [vmem:[%s2614_s22 + $0xb0] sm:$0xff] }
 0x18d   : > { %v737_v42 = vmax.f32 %v666_v37, 0.0  ;;  %v744_v31 = vpack.c.bf16 %v732_v18, %v728_v27  ;;  %v892_v37 = vld [vmem:[%s2614_s22 + $0x38] sm:$0xff] }
 0x18e   : > { %v738_v43 = vmax.f32 %v685_v38, 0.0  ;;  %v2840_v38 = vpop.permute.xlu2 %751 }
 0x18f   : > { %v701_v44 = vpop.f32.mrf.mxu2  ;;  %v745_v48 = vpack.c.bf16 %v737_v42, %v733_v35  ;;  %v896_v35 = vld [vmem:[%s2614_s22 + $0xb8] sm:$0xff] }
 0x190   : > { %v720_v45 = vpop.f32.mrf.mxu3  ;;  %v746_v49 = vpack.c.bf16 %v738_v43, %v734_v36  ;;  %v702_v56 = vadd.f32 %v701_v44, %v2755_v22  ;;  %v891_v36 = vld [vmem:[%s2614_s22 + $0x30] sm:$0xff] }
 0x191   : > { %763 = vmatpush.bf16.msra.mxu0 %v745_v48  ;;  %v721_v57 = vadd.f32 %v720_v45, %v2755_v22 }
 0x192   : > { %776 = vmatpush.bf16.msra.mxu1 %v746_v49  ;;  %v735_v15 = vmax.f32 %v702_v56, 0.0 }
 0x193   : > { %v736_v16 = vmax.f32 %v721_v57, 0.0 }
 0x195   : > { %764 = vmatpush.bf16.msra.mxu0 %v741_v52 }
 0x196   : > { %777 = vmatpush.bf16.msra.mxu1 %v742_v53 }
 0x197   : > { %v703_v59 = vpop.f32.mrf.mxu2 }
 0x198   : > { %v722_v61 = vpop.f32.mrf.mxu3  ;;  %v704_v4 = vadd.f32 %v703_v59, %v2761_v30  ;;  %2184 = vmatmul.msk.bf16.vlgmr.msra.gmra.mxu0 %vm642_vm2, %v2778_v58 }
 0x199   : > { %2192 = vmatpush.msk.msrb.mxu0 %vm459_vm0, %v897_v54  ;;  %v723_v7 = vadd.f32 %v722_v61, %v2761_v30  ;;  %2185 = vmatmul.msk.bf16.vlgmr.msra.gmra.mxu1 %vm642_vm2, %v2778_v58 }
 0x19a   : > { %2197 = vmatpush.msk.msrb.mxu1 %vm459_vm0, %v898_v55  ;;  %v739_v17 = vmax.f32 %v704_v4, 0.0 }
 0x19b   : > { %v740_v23 = vmax.f32 %v723_v7, 0.0  ;;  %927 = vmatpush.msrb.mxu0 %v893_v62 }
 0x19c   : > { %956 = vmatpush.msrb.mxu1 %v894_v0  ;;  %v747_v25 = vpack.c.bf16 %v739_v17, %v735_v15 }
 0x19d   : > { %v748_v21 = vpack.c.bf16 %v740_v23, %v736_v16  ;;  %928 = vmatpush.msrb.mxu0 %v889_v10 }
 0x19e   : > { %957 = vmatpush.msrb.mxu1 %v890_v12  ;;  %789 = vmatpush.bf16.msra.mxu2 %v747_v25 }
 0x19f   : > { %802 = vmatpush.bf16.msra.mxu3 %v748_v21 }
 0x1a2   : > { %790 = vmatpush.bf16.msra.mxu2 %v743_v28 }
 0x1a3   : > { %803 = vmatpush.bf16.msra.mxu3 %v744_v31 }
 0x1a5   : > { %2186 = vmatmul.msk.bf16.vlgmr.msra.gmra.mxu2 %vm642_vm2, %v2778_v58 }
 0x1a6   : > { %2202 = vmatpush.msk.msrb.mxu2 %vm459_vm0, %v899_v32  ;;  %2187 = vmatmul.msk.bf16.vlgmr.msra.gmra.mxu3 %vm642_vm2, %v2778_v58 }
 0x1a7   : > { %2207 = vmatpush.msk.msrb.mxu3 %vm459_vm0, %v900_v33 }
 0x1a8   : > { %985 = vmatpush.msrb.mxu2 %v895_v34  ;;  %2193 = vmatmul.msk.f32.vlgmr.msrb.gmra.mxu0 %vm446_vm1, %v2635_v63 }
 0x1a9   : > { %1014 = vmatpush.msrb.mxu3 %v896_v35  ;;  %2198 = vmatmul.msk.f32.vlgmr.msrb.gmra.mxu1 %vm446_vm1, %v2635_v63 }
 0x1aa   : > { %986 = vmatpush.msrb.mxu2 %v891_v36 }
 0x1ab   : > { %1015 = vmatpush.msrb.mxu3 %v892_v37 }
 0x1b0   : > { %2194 = vmatmul.msk.f32.gmra.mxu0 %vm446_vm1, %v2654_v2 }
 0x1b1   : > { %2199 = vmatmul.msk.f32.gmra.mxu1 %vm446_vm1, %v2654_v2 }
 0x1b5   : > { %2203 = vmatmul.msk.f32.vlgmr.msrb.gmra.mxu2 %vm446_vm1, %v2635_v63 }
 0x1b6   : > { %2208 = vmatmul.msk.f32.vlgmr.msrb.gmra.mxu3 %vm446_vm1, %v2635_v63 }
 0x1b8   : > { %2195 = vmatmul.msk.f32.gmra.mxu0 %vm446_vm1, %v2673_v5 }
 0x1b9   : > { %2200 = vmatmul.msk.f32.gmra.mxu1 %vm446_vm1, %v2673_v5 }
 0x1bd   : > { %2204 = vmatmul.msk.f32.gmra.mxu2 %vm446_vm1, %v2654_v2 }
 0x1be   : > { %2209 = vmatmul.msk.f32.gmra.mxu3 %vm446_vm1, %v2654_v2 }
 0x1c0   : > { %2196 = vmatmul.msk.f32.gmra.mxu0 %vm446_vm1, %v2686_v6 }
 0x1c1   : > { %2201 = vmatmul.msk.f32.gmra.mxu1 %vm446_vm1, %v2686_v6 }
 0x1c5   : > { %2205 = vmatmul.msk.f32.gmra.mxu2 %vm446_vm1, %v2673_v5 }
 0x1c6   : > { %2210 = vmatmul.msk.f32.gmra.mxu3 %vm446_vm1, %v2673_v5 }
 0x1cd   : > { %2206 = vmatmul.msk.f32.gmra.mxu2 %vm446_vm1, %v2686_v6 }
 0x1ce   : > { %2211 = vmatmul.msk.f32.gmra.mxu3 %vm446_vm1, %v2686_v6 }
 0x215   : > { %v766_v40 = vpop.f32.mrf.mxu0 }
 0x216   : > { %v779_v41 = vpop.f32.mrf.mxu1  ;;  %v767_v42 = vadd.f32 %v766_v40, %v2840_v38 }
 0x217   : > { %v780_v43 = vadd.f32 %v779_v41, %v2840_v38 }
 0x218   : > { %v2188_v44 = vmul.f32 -1.442695, %v767_v42 }
 0x219   : > { %v2189_v45 = vmul.f32 -1.442695, %v780_v43 }
 0x21a   : > { %2335 = vpow2.f32 %v2188_v44 }
 0x21b   : > { %2337 = vpow2.f32 %v2189_v45 }
 0x21d   : > { %v768_v46 = vpop.f32.mrf.mxu0 }
 0x21e   : > { %v781_v47 = vpop.f32.mrf.mxu1 }
 0x220   : > { %v2336_v48 = vpop.eup %2335 }
 0x221   : > { %v2338_v49 = vpop.eup %2337  ;;  %v821_v50 = vadd.f32 1.0, %v2336_v48 }
 0x222   : > { %v822_v51 = vadd.f32 1.0, %v2338_v49 }
 0x223   : > { %2339 = vrcp.f32 %v821_v50  ;;  %v836_v7 = vand.u32 2147483648, %v821_v50  ;;  %v834_v15 = vand.u32 2147483647, %v821_v50  ;;  %vm830_vm5 = vweird.f32 %v821_v50 }
 0x224   : > { %2341 = vrcp.f32 %v822_v51  ;;  %v851_v16 = vand.u32 2147483648, %v822_v51  ;;  %v849_v23 = vand.u32 2147483647, %v822_v51  ;;  %vm845_vm7 = vweird.f32 %v822_v51 }
 0x225   : > { %v2846_v52 = vpop.f32.mrf.mxu0  ;;  %v837_v21 = vor.u32 1.1754944e-38, %v836_v7  ;;  %vm835_vm8 = vcmp.eq.f32.partialorder %v834_v15, 8.507059e+37 }
 0x226   : > { %v2848_v53 = vpop.f32.mrf.mxu1  ;;  %v852_v31 = vor.u32 1.1754944e-38, %v851_v16  ;;  %vm850_vm10 = vcmp.eq.f32.partialorder %v849_v23, 8.507059e+37  ;;  %v931_v49 = vadd.f32 %v2846_v52, %v2698_v14 }
 0x228   : > { %v792_v54 = vpop.f32.mrf.mxu2 }
 0x229   : > { %v805_v55 = vpop.f32.mrf.mxu3  ;;  %v793_v56 = vadd.f32 %v792_v54, %v2840_v38  ;;  %v2340_v59 = vpop.eup %2339 }
 0x22a   : > { %v806_v57 = vadd.f32 %v805_v55, %v2840_v38  ;;  %v2342_v61 = vpop.eup %2341  ;;  %v826_v62 = vmul.f32 %v2340_v59, %v821_v50  ;;  %vm831_vm3 = vweird.f32 %v2340_v59  ;;  %v960_v50 = vadd.f32 %v2848_v53, %v2698_v14 }
 0x22b   : > { %v2190_v0 = vmul.f32 -1.442695, %v793_v56  ;;  %v841_v3 = vmul.f32 %v2342_v61, %v822_v51  ;;  %vm846_vm4 = vweird.f32 %v2342_v61  ;;  %vm832_vm6 = vmor %vm830_vm5, %vm831_vm3 }
 0x22c   : > { %v2191_v1 = vmul.f32 -1.442695, %v806_v57  ;;  %v827_v4 = vsub.f32 1.0, %v826_v62  ;;  %vm847_vm9 = vmor %vm845_vm7, %vm846_vm4 }
 0x22d   : > { %2343 = vpow2.f32 %v2190_v0  ;;  %v842_v8 = vsub.f32 1.0, %v841_v3  ;;  %v933_v9 = vpop.f32.mrf.mxu0 }
 0x22e   : > { %2345 = vpow2.f32 %v2191_v1  ;;  %v962_v10 = vpop.f32.mrf.mxu1  ;;  %v828_v12 = vmul.f32 %v2340_v59, %v827_v4  ;;  %v934_v44 = vadd.f32 %v933_v9, %v2702_v20 }
 0x22f   : > { %v843_v17 = vmul.f32 %v2342_v61, %v842_v8  ;;  %v963_v57 = vadd.f32 %v962_v10, %v2702_v20 }
 0x230   : > { %v794_v24 = vpop.f32.mrf.mxu2  ;;  %v829_v25 = vadd.f32 %v2340_v59, %v828_v12  ;;  %v1033_v56 = vmax.f32 %v934_v44, 0.0 }
 0x231   : > { %v807_v18 = vpop.f32.mrf.mxu3  ;;  %v844_v26 = vadd.f32 %v2342_v61, %v843_v17  ;;  %v1034_v23 = vmax.f32 %v963_v57, 0.0 }
 0x232   : > { %v833_v28 = vsel %vm832_vm6, %v2340_v59, %v829_v25 }
 0x233   : > { %v2344_v27 = vpop.eup %2343  ;;  %v838_v33 = vsel %vm835_vm8, %v837_v21, %v833_v28  ;;  %v848_v34 = vsel %vm847_vm9, %v2342_v61, %v844_v26  ;;  %v1029_v21 = vmax.f32 %v931_v49, 0.0  ;;  %v1030_v28 = vmax.f32 %v960_v50, 0.0 }
 0x234   : > { %v2346_v32 = vpop.eup %2345  ;;  %v823_v35 = vadd.f32 1.0, %v2344_v27  ;;  %885 = vst [vmem:[%s2855_s18] sm:$0xff] %v838_v33  ;;  %v853_v36 = vsel %vm850_vm10, %v852_v31, %v848_v34 }
 0x235   : > { %v824_v37 = vadd.f32 1.0, %v2346_v32  ;;  %886 = vst [vmem:[%s2855_s18 + $0x8] sm:$0xff] %v853_v36  ;;  %v936_v40 = vpop.f32.mrf.mxu0  ;;  %v1045_v36 = vpack.c.bf16 %v1033_v56, %v1029_v21 }
 0x236   : > { %2347 = vrcp.f32 %v823_v35  ;;  %v965_v41 = vpop.f32.mrf.mxu1  ;;  %v937_v46 = vadd.f32 %v936_v40, %v2696_v13  ;;  %v864_v54 = vand.u32 2147483647, %v823_v35  ;;  %v866_v0 = vand.u32 2147483648, %v823_v35 }
 0x237   : > { %2349 = vrcp.f32 %v824_v37  ;;  %v966_v47 = vadd.f32 %v965_v41, %v2696_v13  ;;  %v881_v7 = vand.u32 2147483648, %v824_v37  ;;  %v879_v10 = vand.u32 2147483647, %v824_v37 }
 0x238   : > { %v2859_v42 = vpop.f32.mrf.mxu2  ;;  %v1037_v52 = vmax.f32 %v937_v46, 0.0  ;;  %vm860_vm13 = vweird.f32 %v823_v35  ;;  %v867_v26 = vor.u32 1.1754944e-38, %v866_v0  ;;  %vm875_vm15 = vweird.f32 %v824_v37 }
 0x239   : > { %v2861_v43 = vpop.f32.mrf.mxu3  ;;  %v1038_v8 = vmax.f32 %v966_v47, 0.0  ;;  %vm865_vm3 = vcmp.eq.f32.partialorder %v864_v54, 8.507059e+37  ;;  %v882_v32 = vor.u32 1.1754944e-38, %v881_v7  ;;  %vm880_vm5 = vcmp.eq.f32.partialorder %v879_v10, 8.507059e+37 }
 0x23a   : > { %v1046_v40 = vpack.c.bf16 %v1034_v23, %v1030_v28  ;;  %v989_v54 = vadd.f32 %v2859_v42, %v2698_v14 }
 0x23c   : > { %v2348_v45 = vpop.eup %2347 }
 0x23d   : > { %v2350_v48 = vpop.eup %2349  ;;  %v856_v51 = vmul.f32 %v2348_v45, %v823_v35  ;;  %v939_v59 = vpop.f32.mrf.mxu0  ;;  %vm861_vm11 = vweird.f32 %v2348_v45 }
 0x23e   : > { %v871_v55 = vmul.f32 %v2350_v48, %v824_v37  ;;  %v968_v61 = vpop.f32.mrf.mxu1  ;;  %v940_v1 = vadd.f32 %v939_v59, %v2700_v19  ;;  %vm876_vm12 = vweird.f32 %v2350_v48  ;;  %vm862_vm14 = vmor %vm860_vm13, %vm861_vm11 }
 0x23f   : > { %v857_v62 = vsub.f32 1.0, %v856_v51  ;;  %v969_v3 = vadd.f32 %v968_v61, %v2700_v19  ;;  %vm877_vm4 = vmor %vm875_vm15, %vm876_vm12 }
 0x240   : > { %v872_v4 = vsub.f32 1.0, %v871_v55  ;;  %v991_v9 = vpop.f32.mrf.mxu2  ;;  %v1041_v15 = vmax.f32 %v940_v1, 0.0  ;;  %v1018_v55 = vadd.f32 %v2861_v43, %v2698_v14 }
 0x241   : > { %v1020_v53 = vpop.f32.mrf.mxu3  ;;  %v858_v12 = vmul.f32 %v2348_v45, %v857_v62  ;;  %v1042_v16 = vmax.f32 %v969_v3, 0.0 }
 0x242   : > { %v873_v17 = vmul.f32 %v2350_v48, %v872_v4  ;;  %v1049_v18 = vpack.c.bf16 %v1041_v15, %v1037_v52  ;;  %v1021_v49 = vadd.f32 %v1020_v53, %v2702_v20  ;;  %v1031_v4 = vmax.f32 %v989_v54, 0.0  ;;  %v1285_v54 = vld [vmem:[%s2614_s22 + $0x40] sm:$0xff] }
 0x243   : > { %v859_v24 = vadd.f32 %v2348_v45, %v858_v12  ;;  %v1050_v25 = vpack.c.bf16 %v1042_v16, %v1038_v8  ;;  %v1032_v7 = vmax.f32 %v1018_v55, 0.0  ;;  %v1286_v55 = vld [vmem:[%s2614_s22 + $0x48] sm:$0xff] }
 0x244   : > { %v874_v27 = vadd.f32 %v2350_v48, %v873_v17  ;;  %1059 = vmatpush.bf16.msra.mxu0 %v1049_v18  ;;  %v1036_v0 = vmax.f32 %v1021_v49, 0.0  ;;  %v1294_v49 = vld [vmem:[%s2614_s22 + $0x148] sm:$0x1] }
 0x245   : > { %v863_v31 = vsel %vm862_vm14, %v2348_v45, %v859_v24  ;;  %1078 = vmatpush.bf16.msra.mxu1 %v1050_v25 }
 0x246   : > { %v868_v33 = vsel %vm865_vm3, %v867_v26, %v863_v31  ;;  %v878_v34 = vsel %vm877_vm4, %v2350_v48, %v874_v27  ;;  %v992_v48 = vadd.f32 %v991_v9, %v2702_v20  ;;  %v1048_v8 = vpack.c.bf16 %v1036_v0, %v1032_v7 }
 0x247   : > { %887 = vst [vmem:[%s2855_s18 + $0x10] sm:$0xff] %v868_v33  ;;  %v883_v35 = vsel %vm880_vm5, %v882_v32, %v878_v34 }
 0x248   : > { %888 = vst [vmem:[%s2855_s18 + $0x18] sm:$0xff] %v883_v35  ;;  %v994_v41 = vpop.f32.mrf.mxu2  ;;  %1060 = vmatpush.bf16.msra.mxu0 %v1045_v36  ;;  %v1035_v62 = vmax.f32 %v992_v48, 0.0  ;;  %v1293_v48 = vld [vmem:[%s2614_s22 + $0x140] sm:$0x1] }
 0x249   : > { %v1023_v44 = vpop.f32.mrf.mxu3  ;;  %1079 = vmatpush.bf16.msra.mxu1 %v1046_v40  ;;  %v995_v37 = vadd.f32 %v994_v41, %v2696_v13 }
 0x24a   : > { %v1024_v45 = vadd.f32 %v1023_v44, %v2696_v13  ;;  %v1047_v52 = vpack.c.bf16 %v1035_v62, %v1031_v4 }
 0x24b   : > { %2212 = vmatmul.msk.bf16.vlgmr.msra.gmra.mxu0 %vm642_vm2, %v2726_v60  ;;  %v1039_v56 = vmax.f32 %v995_v37, 0.0 }
 0x24c   : > { %2214 = vmatmul.msk.bf16.vlgmr.msra.gmra.mxu1 %vm642_vm2, %v2726_v60  ;;  %v1040_v57 = vmax.f32 %v1024_v45, 0.0 }
 0x250   : > { %v997_v46 = vpop.f32.mrf.mxu2 }
 0x251   : > { %v1026_v47 = vpop.f32.mrf.mxu3  ;;  %v998_v50 = vadd.f32 %v997_v46, %v2700_v19 }
 0x252   : > { %v1027_v51 = vadd.f32 %v1026_v47, %v2700_v19 }
 0x253   : > { %v1043_v59 = vmax.f32 %v998_v50, 0.0  ;;  %v1289_v50 = vld [vmem:[%s2614_s22 + $0xc0] sm:$0xff] }
 0x254   : > { %v1044_v61 = vmax.f32 %v1027_v51, 0.0  ;;  %v1290_v51 = vld [vmem:[%s2614_s22 + $0xc8] sm:$0xff] }
 0x255   : > { %v1051_v1 = vpack.c.bf16 %v1043_v59, %v1039_v56 }
 0x256   : > { %v1052_v3 = vpack.c.bf16 %v1044_v61, %v1040_v57 }
 0x257   : > { %1097 = vmatpush.bf16.msra.mxu2 %v1051_v1 }
 0x258   : > { %1116 = vmatpush.bf16.msra.mxu3 %v1052_v3 }
 0x25b   : > { %1098 = vmatpush.bf16.msra.mxu2 %v1047_v52  ;;  %2213 = vmatmul.msk.bf16.gmra.mxu0 %vm642_vm2, %v2745_v11 }
 0x25c   : > { %1117 = vmatpush.bf16.msra.mxu3 %v1048_v8  ;;  %2215 = vmatmul.msk.bf16.gmra.mxu1 %vm642_vm2, %v2745_v11 }
 0x25e   : > { %2216 = vmatmul.msk.bf16.vlgmr.msra.gmra.mxu2 %vm642_vm2, %v2726_v60 }
 0x25f   : > { %2218 = vmatmul.msk.bf16.vlgmr.msra.gmra.mxu3 %vm642_vm2, %v2726_v60 }
 0x26e   : > { %2217 = vmatmul.msk.bf16.gmra.mxu2 %vm642_vm2, %v2745_v11 }
 0x26f   : > { %2219 = vmatmul.msk.bf16.gmra.mxu3 %vm642_vm2, %v2745_v11 }
 0x2c8   : > { %v1062_v42 = vpop.f32.mrf.mxu0 }
 0x2c9   : > { %v1081_v43 = vpop.f32.mrf.mxu1  ;;  %v1063_v26 = vadd.f32 %v1062_v42, %v2767_v39 }
 0x2ca   : > { %v1082_v27 = vadd.f32 %v1081_v43, %v2767_v39 }
 0x2cb   : > { %v1129_v41 = vmax.f32 %v1063_v26, 0.0  ;;  %v1287_v26 = vld [vmem:[%s2614_s22 + $0x50] sm:$0xff] }
 0x2cc   : > { %v1130_v44 = vmax.f32 %v1082_v27, 0.0  ;;  %v1288_v27 = vld [vmem:[%s2614_s22 + $0x58] sm:$0xff] }
 0x2d0   : > { %v1064_v9 = vpop.f32.mrf.mxu0 }
 0x2d1   : > { %v1083_v53 = vpop.f32.mrf.mxu1  ;;  %v1065_v60 = vadd.f32 %v1064_v9, %v2759_v29 }
 0x2d2   : > { %v1084_v24 = vadd.f32 %v1083_v53, %v2759_v29 }
 0x2d3   : > { %v1133_v34 = vmax.f32 %v1065_v60, 0.0 }
 0x2d4   : > { %v1134_v35 = vmax.f32 %v1084_v24, 0.0 }
 0x2d5   : > { %v1145_v46 = vpack.c.bf16 %v1133_v34, %v1129_v41 }
 0x2d6   : > { %v1146_v47 = vpack.c.bf16 %v1134_v35, %v1130_v44 }
 0x2d8   : > { %v1067_v12 = vpop.f32.mrf.mxu0 }
 0x2d9   : > { %v1086_v15 = vpop.f32.mrf.mxu1  ;;  %v1068_v16 = vadd.f32 %v1067_v12, %v2755_v22 }
 0x2da   : > { %v1087_v17 = vadd.f32 %v1086_v15, %v2755_v22 }
 0x2db   : > { %v1137_v28 = vmax.f32 %v1068_v16, 0.0 }
 0x2dc   : > { %v1138_v31 = vmax.f32 %v1087_v17, 0.0 }
 0x2e0   : > { %v1069_v10 = vpop.f32.mrf.mxu0 }
 0x2e1   : > { %v1088_v23 = vpop.f32.mrf.mxu1  ;;  %v1070_v18 = vadd.f32 %v1069_v10, %v2761_v30  ;;  %v1100_v25 = vpop.f32.mrf.mxu2 }
 0x2e2   : > { %v1089_v11 = vadd.f32 %v1088_v23, %v2761_v30  ;;  %v1119_v21 = vpop.f32.mrf.mxu3  ;;  %v1101_v52 = vadd.f32 %v1100_v25, %v2767_v39  ;;  %v1291_v25 = vld [vmem:[%s2614_s22 + $0xd0] sm:$0xff] }
 0x2e3   : > { %v1141_v32 = vmax.f32 %v1070_v18, 0.0  ;;  %v1120_v8 = vadd.f32 %v1119_v21, %v2767_v39  ;;  %v1295_v18 = vld [vmem:[%s2614_s22 + $0x150] sm:$0x1]  ;;  %v1292_v21 = vld [vmem:[%s2614_s22 + $0xd8] sm:$0xff] }
 0x2e4   : > { %v1142_v33 = vmax.f32 %v1089_v11, 0.0  ;;  %v1131_v10 = vmax.f32 %v1101_v52, 0.0  ;;  %v1296_v11 = vld [vmem:[%s2614_s22 + $0x158] sm:$0x1] }
 0x2e5   : > { %v1149_v36 = vpack.c.bf16 %v1141_v32, %v1137_v28  ;;  %v1132_v23 = vmax.f32 %v1120_v8, 0.0 }
 0x2e6   : > { %v1150_v40 = vpack.c.bf16 %v1142_v33, %v1138_v31 }
 0x2e7   : > { %1159 = vmatpush.bf16.msrb.mxu0 %v1149_v36 }
 0x2e8   : > { %1172 = vmatpush.bf16.msrb.mxu1 %v1150_v40 }
 0x2e9   : > { %v1102_v37 = vpop.f32.mrf.mxu2 }
 0x2ea   : > { %v1121_v45 = vpop.f32.mrf.mxu3  ;;  %v1103_v1 = vadd.f32 %v1102_v37, %v2759_v29 }
 0x2eb   : > { %1160 = vmatpush.bf16.msrb.mxu0 %v1145_v46  ;;  %v1122_v3 = vadd.f32 %v1121_v45, %v2759_v29 }
 0x2ec   : > { %1173 = vmatpush.bf16.msrb.mxu1 %v1146_v47  ;;  %v1135_v12 = vmax.f32 %v1103_v1, 0.0 }
 0x2ed   : > { %v1136_v15 = vmax.f32 %v1122_v3, 0.0 }
 0x2ee   : > { %2220 = vmatmul.msk.bf16.vlgmr.msrb.gmra.mxu0 %vm642_vm2, %v2778_v58  ;;  %v1147_v60 = vpack.c.bf16 %v1135_v12, %v1131_v10 }
 0x2ef   : > { %2228 = vmatpush.msk.msra.mxu0 %vm459_vm0, %v1293_v48  ;;  %2221 = vmatmul.msk.bf16.vlgmr.msrb.gmra.mxu1 %vm642_vm2, %v2778_v58  ;;  %v1148_v24 = vpack.c.bf16 %v1136_v15, %v1132_v23 }
 0x2f0   : > { %2233 = vmatpush.msk.msra.mxu1 %vm459_vm0, %v1294_v49 }
 0x2f1   : > { %1323 = vmatpush.msra.mxu0 %v1289_v50  ;;  %v1105_v56 = vpop.f32.mrf.mxu2 }
 0x2f2   : > { %1352 = vmatpush.msra.mxu1 %v1290_v51  ;;  %v1124_v57 = vpop.f32.mrf.mxu3  ;;  %v1106_v59 = vadd.f32 %v1105_v56, %v2755_v22 }
 0x2f3   : > { %1324 = vmatpush.msra.mxu0 %v1285_v54  ;;  %v1125_v61 = vadd.f32 %v1124_v57, %v2755_v22 }
 0x2f4   : > { %1353 = vmatpush.msra.mxu1 %v1286_v55  ;;  %v1139_v42 = vmax.f32 %v1106_v59, 0.0 }
 0x2f5   : > { %v1140_v43 = vmax.f32 %v1125_v61, 0.0 }
 0x2f9   : > { %v1107_v62 = vpop.f32.mrf.mxu2 }
 0x2fa   : > { %v1126_v0 = vpop.f32.mrf.mxu3  ;;  %v1108_v4 = vadd.f32 %v1107_v62, %v2761_v30 }
 0x2fb   : > { %v1127_v7 = vadd.f32 %v1126_v0, %v2761_v30 }
 0x2fc   : > { %v1143_v9 = vmax.f32 %v1108_v4, 0.0 }
 0x2fd   : > { %v1144_v53 = vmax.f32 %v1127_v7, 0.0 }
 0x2fe   : > { %v1151_v16 = vpack.c.bf16 %v1143_v9, %v1139_v42  ;;  %2229 = vmatmul.msk.f32.vlgmr.msra.gmra.mxu0 %vm446_vm1, %v2635_v63 }
 0x2ff   : > { %v1152_v17 = vpack.c.bf16 %v1144_v53, %v1140_v43  ;;  %2234 = vmatmul.msk.f32.vlgmr.msra.gmra.mxu1 %vm446_vm1, %v2635_v63 }
 0x300   : > { %1185 = vmatpush.bf16.msrb.mxu2 %v1151_v16 }
 0x301   : > { %1198 = vmatpush.bf16.msrb.mxu3 %v1152_v17 }
 0x304   : > { %1186 = vmatpush.bf16.msrb.mxu2 %v1147_v60 }
 0x305   : > { %1199 = vmatpush.bf16.msrb.mxu3 %v1148_v24 }
 0x306   : > { %2230 = vmatmul.msk.f32.gmra.mxu0 %vm446_vm1, %v2654_v2 }
 0x307   : > { %2235 = vmatmul.msk.f32.gmra.mxu1 %vm446_vm1, %v2654_v2  ;;  %2222 = vmatmul.msk.bf16.vlgmr.msrb.gmra.mxu2 %vm642_vm2, %v2778_v58 }
 0x308   : > { %2238 = vmatpush.msk.msra.mxu2 %vm459_vm0, %v1295_v18  ;;  %2223 = vmatmul.msk.bf16.vlgmr.msrb.gmra.mxu3 %vm642_vm2, %v2778_v58 }
 0x309   : > { %2243 = vmatpush.msk.msra.mxu3 %vm459_vm0, %v1296_v11 }
 0x30a   : > { %1381 = vmatpush.msra.mxu2 %v1291_v25 }
 0x30b   : > { %1410 = vmatpush.msra.mxu3 %v1292_v21 }
 0x30c   : > { %1382 = vmatpush.msra.mxu2 %v1287_v26 }
 0x30d   : > { %1411 = vmatpush.msra.mxu3 %v1288_v27 }
 0x30e   : > { %2231 = vmatmul.msk.f32.gmra.mxu0 %vm446_vm1, %v2673_v5 }
 0x30f   : > { %2236 = vmatmul.msk.f32.gmra.mxu1 %vm446_vm1, %v2673_v5 }
 0x316   : > { %2232 = vmatmul.msk.f32.gmra.mxu0 %vm446_vm1, %v2686_v6 }
 0x317   : > { %2237 = vmatmul.msk.f32.gmra.mxu1 %vm446_vm1, %v2686_v6  ;;  %2239 = vmatmul.msk.f32.vlgmr.msra.gmra.mxu2 %vm446_vm1, %v2635_v63 }
 0x318   : > { %2244 = vmatmul.msk.f32.vlgmr.msra.gmra.mxu3 %vm446_vm1, %v2635_v63 }
 0x31f   : > { %2240 = vmatmul.msk.f32.gmra.mxu2 %vm446_vm1, %v2654_v2 }
 0x320   : > { %2245 = vmatmul.msk.f32.gmra.mxu3 %vm446_vm1, %v2654_v2 }
 0x327   : > { %2241 = vmatmul.msk.f32.gmra.mxu2 %vm446_vm1, %v2673_v5 }
 0x328   : > { %2246 = vmatmul.msk.f32.gmra.mxu3 %vm446_vm1, %v2673_v5 }
 0x32f   : > { %2242 = vmatmul.msk.f32.gmra.mxu2 %vm446_vm1, %v2686_v6 }
 0x330   : > { %2247 = vmatmul.msk.f32.gmra.mxu3 %vm446_vm1, %v2686_v6 }
 0x36b   : > { %v1162_v58 = vpop.f32.mrf.mxu0 }
 0x36c   : > { %v1175_v63 = vpop.f32.mrf.mxu1  ;;  %v1163_v28 = vadd.f32 %v1162_v58, %v2840_v38 }
 0x36d   : > { %v1176_v31 = vadd.f32 %v1175_v63, %v2840_v38 }
 0x36e   : > { %v2224_v32 = vmul.f32 -1.442695, %v1163_v28 }
 0x36f   : > { %v2225_v2 = vmul.f32 -1.442695, %v1176_v31 }
 0x370   : > { %2351 = vpow2.f32 %v2224_v32 }
 0x371   : > { %2353 = vpow2.f32 %v2225_v2 }
 0x373   : > { %v1164_v33 = vpop.f32.mrf.mxu0 }
 0x374   : > { %v1177_v34 = vpop.f32.mrf.mxu1 }
 0x376   : > { %v2352_v35 = vpop.eup %2351 }
 0x377   : > { %v2354_v5 = vpop.eup %2353  ;;  %v1217_v36 = vadd.f32 1.0, %v2352_v35 }
 0x378   : > { %v1218_v40 = vadd.f32 1.0, %v2354_v5 }
 0x379   : > { %2355 = vrcp.f32 %v1217_v36  ;;  %v1232_v48 = vand.u32 2147483648, %v1217_v36  ;;  %v1230_v55 = vand.u32 2147483647, %v1217_v36  ;;  %vm1226_vm8 = vweird.f32 %v1217_v36 }
 0x37a   : > { %2357 = vrcp.f32 %v1218_v40  ;;  %v1247_v56 = vand.u32 2147483648, %v1218_v40  ;;  %v1245_v59 = vand.u32 2147483647, %v1218_v40  ;;  %vm1241_vm10 = vweird.f32 %v1218_v40 }
 0x37b   : > { %v1326_v41 = vpop.f32.mrf.mxu0  ;;  %v1233_v62 = vor.u32 1.1754944e-38, %v1232_v48  ;;  %vm1231_vm11 = vcmp.eq.f32.partialorder %v1230_v55, 8.507059e+37 }
 0x37c   : > { %v1355_v6 = vpop.f32.mrf.mxu1  ;;  %v1248_v3 = vor.u32 1.1754944e-38, %v1247_v56  ;;  %vm1246_vm13 = vcmp.eq.f32.partialorder %v1245_v59, 8.507059e+37  ;;  %v1327_v32 = vadd.f32 %v1326_v41, %v2698_v14 }
 0x37d   : > { %v1356_v33 = vadd.f32 %v1355_v6, %v2698_v14 }
 0x37f   : > { %v2356_v44 = vpop.eup %2355 }
 0x380   : > { %v2358_v37 = vpop.eup %2357  ;;  %v1222_v45 = vmul.f32 %v2356_v44, %v1217_v36  ;;  %vm1227_vm6 = vweird.f32 %v2356_v44 }
 0x381   : > { %v1237_v46 = vmul.f32 %v2358_v37, %v1218_v40  ;;  %vm1242_vm7 = vweird.f32 %v2358_v37  ;;  %vm1228_vm9 = vmor %vm1226_vm8, %vm1227_vm6 }
 0x382   : > { %v1223_v47 = vsub.f32 1.0, %v1222_v45  ;;  %vm1243_vm12 = vmor %vm1241_vm10, %vm1242_vm7 }
 0x383   : > { %v1238_v49 = vsub.f32 1.0, %v1237_v46  ;;  %v1329_v50 = vpop.f32.mrf.mxu0  ;;  %v1425_v46 = vmax.f32 %v1327_v32, 0.0 }
 0x384   : > { %v1358_v51 = vpop.f32.mrf.mxu1  ;;  %v1224_v54 = vmul.f32 %v2356_v44, %v1223_v47  ;;  %v1330_v26 = vadd.f32 %v1329_v50, %v2702_v20  ;;  %v1426_v47 = vmax.f32 %v1356_v33, 0.0 }
 0x385   : > { %v1239_v57 = vmul.f32 %v2358_v37, %v1238_v49  ;;  %v1359_v58 = vadd.f32 %v1358_v51, %v2702_v20 }
 0x386   : > { %v1225_v61 = vadd.f32 %v2356_v44, %v1224_v54  ;;  %v1429_v5 = vmax.f32 %v1330_v26, 0.0 }
 0x387   : > { %v1240_v0 = vadd.f32 %v2358_v37, %v1239_v57  ;;  %v1430_v36 = vmax.f32 %v1359_v58, 0.0 }
 0x388   : > { %v1229_v1 = vsel %vm1228_vm9, %v2356_v44, %v1225_v61  ;;  %v1441_v49 = vpack.c.bf16 %v1429_v5, %v1425_v46 }
 0x389   : > { %v1234_v4 = vsel %vm1231_vm11, %v1233_v62, %v1229_v1  ;;  %v1244_v7 = vsel %vm1243_vm12, %v2358_v37, %v1240_v0  ;;  %v1442_v41 = vpack.c.bf16 %v1430_v36, %v1426_v47  ;;  %v2991_v1 = vld [vmem:[%s3182_s3] sm:$0xff] }
 0x38a   : > { %1281 = vst [vmem:[%s2855_s18 + $0x20] sm:$0xff] %v1234_v4  ;;  %v1249_v52 = vsel %vm1246_vm13, %v1248_v3, %v1244_v7  ;;  %v1188_v8 = vpop.f32.mrf.mxu2 }
 0x38b   : > { %v1201_v42 = vpop.f32.mrf.mxu3  ;;  %1282 = vst [vmem:[%s2855_s18 + $0x28] sm:$0xff] %v1249_v52  ;;  %v1189_v43 = vadd.f32 %v1188_v8, %v2840_v38  ;;  %v1332_v53 = vpop.f32.mrf.mxu0 }
 0x38c   : > { %v1202_v9 = vadd.f32 %v1201_v42, %v2840_v38  ;;  %v1361_v12 = vpop.f32.mrf.mxu1  ;;  %v1333_v24 = vadd.f32 %v1332_v53, %v2696_v13 }
 0x38d   : > { %v2226_v15 = vmul.f32 -1.442695, %v1189_v43  ;;  %v1362_v18 = vadd.f32 %v1361_v12, %v2696_v13 }
 0x38e   : > { %v2227_v16 = vmul.f32 -1.442695, %v1202_v9  ;;  %v1433_v34 = vmax.f32 %v1333_v24, 0.0 }
 0x38f   : > { %2359 = vpow2.f32 %v2226_v15  ;;  %v1434_v35 = vmax.f32 %v1362_v18, 0.0 }
 0x390   : > { %2361 = vpow2.f32 %v2227_v16 }
 0x392   : > { %v1190_v17 = vpop.f32.mrf.mxu2 }
 0x393   : > { %v1203_v10 = vpop.f32.mrf.mxu3  ;;  %v1335_v23 = vpop.f32.mrf.mxu0 }
 0x394   : > { %v1364_v60 = vpop.f32.mrf.mxu1  ;;  %v1336_v11 = vadd.f32 %v1335_v23, %v2700_v19 }
 0x395   : > { %v1365_v25 = vadd.f32 %v1364_v60, %v2700_v19  ;;  %v2360_v21 = vpop.eup %2359 }
 0x396   : > { %v2362_v27 = vpop.eup %2361  ;;  %v1219_v63 = vadd.f32 1.0, %v2360_v21  ;;  %v1437_v28 = vmax.f32 %v1336_v11, 0.0  ;;  %v3008_v21 = vld [vmem:[%s3182_s3 + $0x8] sm:$0xff] }
 0x397   : > { %v1438_v31 = vmax.f32 %v1365_v25, 0.0  ;;  %v1220_v2 = vadd.f32 1.0, %v2362_v27 }
 0x398   : > { %2363 = vrcp.f32 %v1219_v63  ;;  %v1445_v40 = vpack.c.bf16 %v1437_v28, %v1433_v34  ;;  %v1262_v55 = vand.u32 2147483648, %v1219_v63  ;;  %v1260_v62 = vand.u32 2147483647, %v1219_v63 }
 0x399   : > { %2365 = vrcp.f32 %v1220_v2  ;;  %v1446_v44 = vpack.c.bf16 %v1438_v31, %v1434_v35  ;;  %v1277_v0 = vand.u32 2147483648, %v1220_v2  ;;  %v1275_v4 = vand.u32 2147483647, %v1220_v2 }
 0x39a   : > { %v1384_v37 = vpop.f32.mrf.mxu2  ;;  %1455 = vmatpush.bf16.msrb.mxu0 %v1445_v40  ;;  %vm1256_vm3 = vweird.f32 %v1219_v63  ;;  %v1263_v52 = vor.u32 1.1754944e-38, %v1262_v55  ;;  %vm1271_vm5 = vweird.f32 %v1220_v2  ;;  %vm1261_vm6 = vcmp.eq.f32.partialorder %v1260_v62, 8.507059e+37 }
 0x39b   : > { %v1413_v45 = vpop.f32.mrf.mxu3  ;;  %1474 = vmatpush.bf16.msrb.mxu1 %v1446_v44  ;;  %v1278_v43 = vor.u32 1.1754944e-38, %v1277_v0  ;;  %vm1276_vm8 = vcmp.eq.f32.partialorder %v1275_v4, 8.507059e+37  ;;  %v1385_v26 = vadd.f32 %v1384_v37, %v2698_v14 }
 0x39c   : > { %v1414_v27 = vadd.f32 %v1413_v45, %v2698_v14 }
 0x39d   : > { %v1427_v35 = vmax.f32 %v1385_v26, 0.0 }
 0x39e   : > { %v2364_v48 = vpop.eup %2363  ;;  %1456 = vmatpush.bf16.msrb.mxu0 %v1441_v49  ;;  %v1428_v5 = vmax.f32 %v1414_v27, 0.0 }
 0x39f   : > { %v2366_v50 = vpop.eup %2365  ;;  %v1252_v51 = vmul.f32 %v2364_v48, %v1219_v63  ;;  %1475 = vmatpush.bf16.msrb.mxu1 %v1442_v41  ;;  %vm1257_vm14 = vweird.f32 %v2364_v48 }
 0x3a0   : > { %v1267_v6 = vmul.f32 %v2366_v50, %v1220_v2  ;;  %vm1272_vm15 = vweird.f32 %v2366_v50  ;;  %vm1258_vm4 = vmor %vm1256_vm3, %vm1257_vm14 }
 0x3a1   : > { %v1253_v54 = vsub.f32 1.0, %v1252_v51  ;;  %2248 = vmatmul.msk.bf16.vlgmr.msrb.gmra.mxu0 %vm642_vm2, %v2991_v1  ;;  %vm1273_vm7 = vmor %vm1271_vm5, %vm1272_vm15 }
 0x3a2   : > { %v1268_v56 = vsub.f32 1.0, %v1267_v6  ;;  %v1387_v57 = vpop.f32.mrf.mxu2  ;;  %2250 = vmatmul.msk.bf16.vlgmr.msrb.gmra.mxu1 %vm642_vm2, %v2991_v1 }
 0x3a3   : > { %v1416_v59 = vpop.f32.mrf.mxu3  ;;  %v1254_v61 = vmul.f32 %v2364_v48, %v1253_v54  ;;  %v1388_v23 = vadd.f32 %v1387_v57, %v2702_v20 }
 0x3a4   : > { %v1269_v3 = vmul.f32 %v2366_v50, %v1268_v56  ;;  %v1417_v18 = vadd.f32 %v1416_v59, %v2702_v20 }
 0x3a5   : > { %v1255_v7 = vadd.f32 %v2364_v48, %v1254_v61  ;;  %v1431_v32 = vmax.f32 %v1388_v23, 0.0  ;;  %v1686_v23 = vld [vmem:[%s2614_s22 + $0xe8] sm:$0xff] }
 0x3a6   : > { %v1270_v8 = vadd.f32 %v2366_v50, %v1269_v3  ;;  %v1432_v2 = vmax.f32 %v1417_v18, 0.0  ;;  %v1682_v18 = vld [vmem:[%s2614_s22 + $0x68] sm:$0xff] }
 0x3a7   : > { %v1259_v42 = vsel %vm1258_vm4, %v2364_v48, %v1255_v7  ;;  %v1443_v36 = vpack.c.bf16 %v1431_v32, %v1427_v35 }
 0x3a8   : > { %v1264_v9 = vsel %vm1261_vm6, %v1263_v52, %v1259_v42  ;;  %v1274_v53 = vsel %vm1273_vm7, %v2366_v50, %v1270_v8  ;;  %v1444_v40 = vpack.c.bf16 %v1432_v2, %v1428_v5 }
 0x3a9   : > { %1283 = vst [vmem:[%s2855_s18 + $0x30] sm:$0xff] %v1264_v9  ;;  %v1279_v12 = vsel %vm1276_vm8, %v1278_v43, %v1274_v53 }
 0x3aa   : > { %1284 = vst [vmem:[%s2855_s18 + $0x38] sm:$0xff] %v1279_v12  ;;  %v1390_v15 = vpop.f32.mrf.mxu2  ;;  %v1689_v12 = vld [vmem:[%s2614_s22 + $0x160] sm:$0x1] }
 0x3ab   : > { %v1419_v16 = vpop.f32.mrf.mxu3  ;;  %v1391_v17 = vadd.f32 %v1390_v15, %v2696_v13  ;;  %v1690_v15 = vld [vmem:[%s2614_s22 + $0x168] sm:$0x1] }
 0x3ac   : > { %v1420_v10 = vadd.f32 %v1419_v16, %v2696_v13 }
 0x3ad   : > { %v1435_v58 = vmax.f32 %v1391_v17, 0.0 }
 0x3ae   : > { %v1436_v63 = vmax.f32 %v1420_v10, 0.0  ;;  %v1685_v10 = vld [vmem:[%s2614_s22 + $0xe0] sm:$0xff] }
 0x3b1   : > { %2249 = vmatmul.msk.bf16.gmra.mxu0 %vm642_vm2, %v3008_v21 }
 0x3b2   : > { %v1393_v60 = vpop.f32.mrf.mxu2  ;;  %2251 = vmatmul.msk.bf16.gmra.mxu1 %vm642_vm2, %v3008_v21 }
 0x3b3   : > { %v1422_v24 = vpop.f32.mrf.mxu3  ;;  %v1394_v11 = vadd.f32 %v1393_v60, %v2700_v19  ;;  %v3041_v60 = vld [vmem:[%s3184_s5] sm:$0xf] }
 0x3b4   : > { %v1423_v25 = vadd.f32 %v1422_v24, %v2700_v19  ;;  %v1681_v24 = vld [vmem:[%s2614_s22 + $0x60] sm:$0xff] }
 0x3b5   : > { %v1439_v28 = vmax.f32 %v1394_v11, 0.0 }
 0x3b6   : > { %v1440_v31 = vmax.f32 %v1423_v25, 0.0 }
 0x3b7   : > { %v1447_v33 = vpack.c.bf16 %v1439_v28, %v1435_v58  ;;  %v2402_v58 = vld [vmem:[%s3180_s1] sm:$0xff] }
 0x3b8   : > { %v1448_v34 = vpack.c.bf16 %v1440_v31, %v1436_v63 }
 0x3b9   : > { %1493 = vmatpush.bf16.msrb.mxu2 %v1447_v33 }
 0x3ba   : > { %1512 = vmatpush.bf16.msrb.mxu3 %v1448_v34 }
 0x3bd   : > { %1494 = vmatpush.bf16.msrb.mxu2 %v1443_v36 }
 0x3be   : > { %1513 = vmatpush.bf16.msrb.mxu3 %v1444_v40 }
 0x3c0   : > { %2252 = vmatmul.msk.bf16.vlgmr.msrb.gmra.mxu2 %vm642_vm2, %v2991_v1 }
 0x3c1   : > { %2254 = vmatmul.msk.bf16.vlgmr.msrb.gmra.mxu3 %vm642_vm2, %v2991_v1 }
 0x3d0   : > { %2253 = vmatmul.msk.bf16.gmra.mxu2 %vm642_vm2, %v3008_v21 }
 0x3d1   : > { %2255 = vmatmul.msk.bf16.gmra.mxu3 %vm642_vm2, %v3008_v21 }
 0x41e   : > { %v1458_v44 = vpop.f32.mrf.mxu0 }
 0x41f   : > { %v1477_v37 = vpop.f32.mrf.mxu1  ;;  %v1459_v57 = vadd.f32 %v1458_v44, %v2767_v39 }
 0x420   : > { %v1478_v59 = vadd.f32 %v1477_v37, %v2767_v39  ;;  %v2403_v37 = vld [vmem:[%s3180_s1 + $0x8] sm:$0xff] }
 0x421   : > { %v1525_v42 = vmax.f32 %v1459_v57, 0.0  ;;  %v2404_v57 = vld [vmem:[%s3180_s1 + $0x10] sm:$0xff] }
 0x422   : > { %v1526_v43 = vmax.f32 %v1478_v59, 0.0  ;;  %v1687_v59 = vld [vmem:[%s2614_s22 + $0xf0] sm:$0xff] }
 0x426   : > { %v1460_v45 = vpop.f32.mrf.mxu0 }
 0x427   : > { %v1479_v46 = vpop.f32.mrf.mxu1  ;;  %v1461_v6 = vadd.f32 %v1460_v45, %v2759_v29 }
 0x428   : > { %v1480_v54 = vadd.f32 %v1479_v46, %v2759_v29 }
 0x429   : > { %v1529_v4 = vmax.f32 %v1461_v6, 0.0 }
 0x42a   : > { %v1530_v7 = vmax.f32 %v1480_v54, 0.0 }
 0x42b   : > { %v1541_v9 = vpack.c.bf16 %v1529_v4, %v1525_v42 }
 0x42c   : > { %v1542_v53 = vpack.c.bf16 %v1530_v7, %v1526_v43 }
 0x42e   : > { %v1463_v47 = vpop.f32.mrf.mxu0 }
 0x42f   : > { %v1482_v48 = vpop.f32.mrf.mxu1  ;;  %v1464_v49 = vadd.f32 %v1463_v47, %v2755_v22 }
 0x430   : > { %v1483_v41 = vadd.f32 %v1482_v48, %v2755_v22 }
 0x431   : > { %v1533_v61 = vmax.f32 %v1464_v49, 0.0 }
 0x432   : > { %v1534_v62 = vmax.f32 %v1483_v41, 0.0 }
 0x436   : > { %v1465_v50 = vpop.f32.mrf.mxu0 }
 0x437   : > { %v1484_v51 = vpop.f32.mrf.mxu1  ;;  %v1466_v55 = vadd.f32 %v1465_v50, %v2761_v30 }
 0x438   : > { %v1485_v56 = vadd.f32 %v1484_v51, %v2761_v30 }
 0x439   : > { %v1537_v0 = vmax.f32 %v1466_v55, 0.0  ;;  %v1691_v55 = vld [vmem:[%s2614_s22 + $0x170] sm:$0x1] }
 0x43a   : > { %v1538_v3 = vmax.f32 %v1485_v56, 0.0  ;;  %v1692_v56 = vld [vmem:[%s2614_s22 + $0x178] sm:$0x1] }
 0x43b   : > { %v1545_v52 = vpack.c.bf16 %v1537_v0, %v1533_v61  ;;  %v1688_v61 = vld [vmem:[%s2614_s22 + $0xf8] sm:$0xff] }
 0x43c   : > { %v1546_v8 = vpack.c.bf16 %v1538_v3, %v1534_v62  ;;  %v1683_v62 = vld [vmem:[%s2614_s22 + $0x70] sm:$0xff]  ;;  %v1684_v0 = vld [vmem:[%s2614_s22 + $0x78] sm:$0xff] }
 0x43d   : > { %1555 = vmatpush.bf16.msra.mxu0 %v1545_v52  ;;  %v2405_v3 = vld [vmem:[%s3180_s1 + $0x18] sm:$0xff] }
 0x43e   : > { %1568 = vmatpush.bf16.msra.mxu1 %v1546_v8 }
 0x441   : > { %1556 = vmatpush.bf16.msra.mxu0 %v1541_v9 }
 0x442   : > { %1569 = vmatpush.bf16.msra.mxu1 %v1542_v53 }
 0x443   : > { %v1496_v16 = vpop.f32.mrf.mxu2 }
 0x444   : > { %v1515_v17 = vpop.f32.mrf.mxu3  ;;  %2256 = vmatmul.msk.bf16.vlgmr.msra.gmra.mxu0 %vm642_vm2, %v3041_v60  ;;  %v1497_v45 = vadd.f32 %v1496_v16, %v2767_v39 }
 0x445   : > { %2264 = vmatpush.msk.msrb.mxu0 %vm459_vm0, %v1689_v12  ;;  %2257 = vmatmul.msk.bf16.vlgmr.msra.gmra.mxu1 %vm642_vm2, %v3041_v60  ;;  %v1516_v46 = vadd.f32 %v1515_v17, %v2767_v39 }
 0x446   : > { %2269 = vmatpush.msk.msrb.mxu1 %vm459_vm0, %v1690_v15  ;;  %v1527_v50 = vmax.f32 %v1497_v45, 0.0 }
 0x447   : > { %1719 = vmatpush.msrb.mxu0 %v1685_v10  ;;  %v1528_v51 = vmax.f32 %v1516_v46, 0.0 }
 0x448   : > { %1748 = vmatpush.msrb.mxu1 %v1686_v23 }
 0x449   : > { %1720 = vmatpush.msrb.mxu0 %v1681_v24 }
 0x44a   : > { %1749 = vmatpush.msrb.mxu1 %v1682_v18 }
 0x44b   : > { %v1498_v11 = vpop.f32.mrf.mxu2 }
 0x44c   : > { %v1517_v25 = vpop.f32.mrf.mxu3  ;;  %v1499_v34 = vadd.f32 %v1498_v11, %v2759_v29 }
 0x44d   : > { %v1518_v35 = vadd.f32 %v1517_v25, %v2759_v29 }
 0x44e   : > { %v1531_v49 = vmax.f32 %v1499_v34, 0.0 }
 0x44f   : > { %v1532_v41 = vmax.f32 %v1518_v35, 0.0 }
 0x450   : > { %v1543_v6 = vpack.c.bf16 %v1531_v49, %v1527_v50 }
 0x451   : > { %v1544_v54 = vpack.c.bf16 %v1532_v41, %v1528_v51 }
 0x453   : > { %v1501_v26 = vpop.f32.mrf.mxu2 }
 0x454   : > { %v1520_v27 = vpop.f32.mrf.mxu3  ;;  %2265 = vmatmul.msk.f32.vlgmr.msrb.gmra.mxu0 %vm446_vm1, %v2402_v58  ;;  %v1502_v63 = vadd.f32 %v1501_v26, %v2755_v22 }
 0x455   : > { %2270 = vmatmul.msk.f32.vlgmr.msrb.gmra.mxu1 %vm446_vm1, %v2402_v58  ;;  %v1521_v28 = vadd.f32 %v1520_v27, %v2755_v22 }
 0x456   : > { %v1535_v5 = vmax.f32 %v1502_v63, 0.0 }
 0x457   : > { %v1536_v36 = vmax.f32 %v1521_v28, 0.0 }
 0x45b   : > { %v1503_v31 = vpop.f32.mrf.mxu2 }
 0x45c   : > { %v1522_v32 = vpop.f32.mrf.mxu3  ;;  %v1504_v2 = vadd.f32 %v1503_v31, %v2761_v30  ;;  %2266 = vmatmul.msk.f32.gmra.mxu0 %vm446_vm1, %v2403_v37 }
 0x45d   : > { %v1523_v33 = vadd.f32 %v1522_v32, %v2761_v30  ;;  %2271 = vmatmul.msk.f32.gmra.mxu1 %vm446_vm1, %v2403_v37 }
 0x45e   : > { %v1539_v40 = vmax.f32 %v1504_v2, 0.0 }
 0x45f   : > { %v1540_v44 = vmax.f32 %v1523_v33, 0.0 }
 0x460   : > { %v1547_v47 = vpack.c.bf16 %v1539_v40, %v1535_v5 }
 0x461   : > { %v1548_v48 = vpack.c.bf16 %v1540_v44, %v1536_v36 }
 0x462   : > { %1581 = vmatpush.bf16.msra.mxu2 %v1547_v47 }
 0x463   : > { %1594 = vmatpush.bf16.msra.mxu3 %v1548_v48 }
 0x464   : > { %2267 = vmatmul.msk.f32.gmra.mxu0 %vm446_vm1, %v2404_v57 }
 0x465   : > { %2272 = vmatmul.msk.f32.gmra.mxu1 %vm446_vm1, %v2404_v57 }
 0x466   : > { %1582 = vmatpush.bf16.msra.mxu2 %v1543_v6 }
 0x467   : > { %1595 = vmatpush.bf16.msra.mxu3 %v1544_v54 }
 0x469   : > { %2258 = vmatmul.msk.bf16.vlgmr.msra.gmra.mxu2 %vm642_vm2, %v3041_v60 }
 0x46a   : > { %2274 = vmatpush.msk.msrb.mxu2 %vm459_vm0, %v1691_v55  ;;  %2259 = vmatmul.msk.bf16.vlgmr.msra.gmra.mxu3 %vm642_vm2, %v3041_v60 }
 0x46b   : > { %2279 = vmatpush.msk.msrb.mxu3 %vm459_vm0, %v1692_v56 }
 0x46c   : > { %1777 = vmatpush.msrb.mxu2 %v1687_v59  ;;  %2268 = vmatmul.msk.f32.gmra.mxu0 %vm446_vm1, %v2405_v3 }
 0x46d   : > { %1806 = vmatpush.msrb.mxu3 %v1688_v61  ;;  %2273 = vmatmul.msk.f32.gmra.mxu1 %vm446_vm1, %v2405_v3 }
 0x46e   : > { %1778 = vmatpush.msrb.mxu2 %v1683_v62 }
 0x46f   : > { %1807 = vmatpush.msrb.mxu3 %v1684_v0 }
 0x479   : > { %2275 = vmatmul.msk.f32.vlgmr.msrb.gmra.mxu2 %vm446_vm1, %v2402_v58 }
 0x47a   : > { %2280 = vmatmul.msk.f32.vlgmr.msrb.gmra.mxu3 %vm446_vm1, %v2402_v58 }
 0x481   : > { %2276 = vmatmul.msk.f32.gmra.mxu2 %vm446_vm1, %v2403_v37 }
 0x482   : > { %2281 = vmatmul.msk.f32.gmra.mxu3 %vm446_vm1, %v2403_v37 }
 0x489   : > { %2277 = vmatmul.msk.f32.gmra.mxu2 %vm446_vm1, %v2404_v57 }
 0x48a   : > { %2282 = vmatmul.msk.f32.gmra.mxu3 %vm446_vm1, %v2404_v57 }
 0x491   : > { %2278 = vmatmul.msk.f32.gmra.mxu2 %vm446_vm1, %v2405_v3 }
 0x492   : > { %2283 = vmatmul.msk.f32.gmra.mxu3 %vm446_vm1, %v2405_v3 }
 0x4c1   : > { %v1558_v4 = vpop.f32.mrf.mxu0 }
 0x4c2   : > { %v1571_v7 = vpop.f32.mrf.mxu1  ;;  %v1559_v52 = vadd.f32 %v1558_v4, %v2840_v38 }
 0x4c3   : > { %v1572_v8 = vadd.f32 %v1571_v7, %v2840_v38 }
 0x4c4   : > { %v2260_v42 = vmul.f32 -1.442695, %v1559_v52 }
 0x4c5   : > { %v2261_v43 = vmul.f32 -1.442695, %v1572_v8 }
 0x4c6   : > { %2367 = vpow2.f32 %v2260_v42 }
 0x4c7   : > { %2369 = vpow2.f32 %v2261_v43 }
 0x4c9   : > { %v1560_v9 = vpop.f32.mrf.mxu0 }
 0x4ca   : > { %v1573_v53 = vpop.f32.mrf.mxu1 }
 0x4cc   : > { %v2368_v12 = vpop.eup %2367 }
 0x4cd   : > { %v2370_v15 = vpop.eup %2369  ;;  %v1613_v16 = vadd.f32 1.0, %v2368_v12 }
 0x4ce   : > { %v1614_v17 = vadd.f32 1.0, %v2370_v15 }
 0x4cf   : > { %2371 = vrcp.f32 %v1613_v16  ;;  %v1628_v27 = vand.u32 2147483648, %v1613_v16  ;;  %v1626_v32 = vand.u32 2147483647, %v1613_v16  ;;  %vm1622_vm9 = vweird.f32 %v1613_v16 }
 0x4d0   : > { %2373 = vrcp.f32 %v1614_v17  ;;  %v1643_v2 = vand.u32 2147483648, %v1614_v17  ;;  %v1641_v34 = vand.u32 2147483647, %v1614_v17  ;;  %vm1637_vm11 = vweird.f32 %v1614_v17 }
 0x4d1   : > { %v1722_v10 = vpop.f32.mrf.mxu0  ;;  %v1629_v5 = vor.u32 1.1754944e-38, %v1628_v27  ;;  %vm1627_vm12 = vcmp.eq.f32.partialorder %v1626_v32, 8.507059e+37 }
 0x4d2   : > { %v1751_v23 = vpop.f32.mrf.mxu1  ;;  %v1644_v44 = vor.u32 1.1754944e-38, %v1643_v2  ;;  %vm1642_vm14 = vcmp.eq.f32.partialorder %v1641_v34, 8.507059e+37  ;;  %v1723_v57 = vadd.f32 %v1722_v10, %v2698_v14 }
 0x4d3   : > { %v1752_v59 = vadd.f32 %v1751_v23, %v2698_v14 }
 0x4d5   : > { %v2372_v24 = vpop.eup %2371 }
 0x4d6   : > { %v2374_v18 = vpop.eup %2373  ;;  %v1618_v11 = vmul.f32 %v2372_v24, %v1613_v16  ;;  %vm1623_vm0 = vweird.f32 %v2372_v24  ;;  %v1821_v16 = vmax.f32 %v1723_v57, 0.0 }
 0x4d7   : > { %v1633_v25 = vmul.f32 %v2374_v18, %v1614_v17  ;;  %vm1638_vm1 = vweird.f32 %v2374_v18  ;;  %vm1624_vm10 = vmor %vm1622_vm9, %vm1623_vm0  ;;  %v1822_v17 = vmax.f32 %v1752_v59, 0.0 }
 0x4d8   : > { %v1619_v26 = vsub.f32 1.0, %v1618_v11  ;;  %vm1639_vm13 = vmor %vm1637_vm11, %vm1638_vm1 }
 0x4d9   : > { %v1634_v58 = vsub.f32 1.0, %v1633_v25  ;;  %v1725_v63 = vpop.f32.mrf.mxu0 }
 0x4da   : > { %v1754_v28 = vpop.f32.mrf.mxu1  ;;  %v1620_v31 = vmul.f32 %v2372_v24, %v1619_v26  ;;  %v1726_v50 = vadd.f32 %v1725_v63, %v2702_v20 }
 0x4db   : > { %v1635_v33 = vmul.f32 %v2374_v18, %v1634_v58  ;;  %v1755_v51 = vadd.f32 %v1754_v28, %v2702_v20 }
 0x4dc   : > { %v1621_v35 = vadd.f32 %v2372_v24, %v1620_v31  ;;  %v1825_v42 = vmax.f32 %v1726_v50, 0.0 }
 0x4dd   : > { %v1636_v36 = vadd.f32 %v2374_v18, %v1635_v33  ;;  %v1826_v43 = vmax.f32 %v1755_v51, 0.0 }
 0x4de   : > { %v1625_v40 = vsel %vm1624_vm10, %v2372_v24, %v1621_v35  ;;  %v1837_v10 = vpack.c.bf16 %v1825_v42, %v1821_v16 }
 0x4df   : > { %v1630_v37 = vsel %vm1627_vm12, %v1629_v5, %v1625_v40  ;;  %v1640_v45 = vsel %vm1639_vm13, %v2374_v18, %v1636_v36  ;;  %v1838_v23 = vpack.c.bf16 %v1826_v43, %v1822_v17 }
 0x4e0   : > { %1677 = vst [vmem:[%s2855_s18 + $0x40] sm:$0xff] %v1630_v37  ;;  %v1645_v46 = vsel %vm1642_vm14, %v1644_v44, %v1640_v45 }
 0x4e1   : > { %1678 = vst [vmem:[%s2855_s18 + $0x48] sm:$0xff] %v1645_v46  ;;  %v1728_v47 = vpop.f32.mrf.mxu0 }
 0x4e2   : > { %v1757_v48 = vpop.f32.mrf.mxu1  ;;  %v1729_v49 = vadd.f32 %v1728_v47, %v2696_v13 }
 0x4e3   : > { %v1758_v41 = vadd.f32 %v1757_v48, %v2696_v13 }
 0x4e4   : > { %v1829_v61 = vmax.f32 %v1729_v49, 0.0 }
 0x4e5   : > { %v1830_v62 = vmax.f32 %v1758_v41, 0.0 }
 0x4e9   : > { %v1731_v6 = vpop.f32.mrf.mxu0 }
 0x4ea   : > { %v1760_v54 = vpop.f32.mrf.mxu1  ;;  %v1732_v55 = vadd.f32 %v1731_v6, %v2700_v19 }
 0x4eb   : > { %v1761_v56 = vadd.f32 %v1760_v54, %v2700_v19 }
 0x4ec   : > { %v1584_v0 = vpop.f32.mrf.mxu2  ;;  %v1833_v4 = vmax.f32 %v1732_v55, 0.0 }
 0x4ed   : > { %v1597_v3 = vpop.f32.mrf.mxu3  ;;  %v1834_v7 = vmax.f32 %v1761_v56, 0.0  ;;  %v1585_v52 = vadd.f32 %v1584_v0, %v2840_v38 }
 0x4ee   : > { %v1598_v8 = vadd.f32 %v1597_v3, %v2840_v38  ;;  %v1841_v9 = vpack.c.bf16 %v1833_v4, %v1829_v61 }
 0x4ef   : > { %v1842_v53 = vpack.c.bf16 %v1834_v7, %v1830_v62  ;;  %v2262_v12 = vmul.f32 -1.442695, %v1585_v52 }
 0x4f0   : > { %v2263_v15 = vmul.f32 -1.442695, %v1598_v8  ;;  %1851 = vmatpush.bf16.msra.mxu0 %v1841_v9 }
 0x4f1   : > { %2375 = vpow2.f32 %v2262_v12  ;;  %1870 = vmatpush.bf16.msra.mxu1 %v1842_v53 }
 0x4f2   : > { %2377 = vpow2.f32 %v2263_v15 }
 0x4f4   : > { %v1586_v24 = vpop.f32.mrf.mxu2  ;;  %1852 = vmatpush.bf16.msra.mxu0 %v1837_v10 }
 0x4f5   : > { %v1599_v18 = vpop.f32.mrf.mxu3  ;;  %1871 = vmatpush.bf16.msra.mxu1 %v1838_v23 }
 0x4f7   : > { %v2376_v11 = vpop.eup %2375  ;;  %2284 = vmatmul.msk.bf16.vlgmr.msra.gmra.mxu0 %vm642_vm2, %v2991_v1 }
 0x4f8   : > { %v2378_v25 = vpop.eup %2377  ;;  %v1615_v26 = vadd.f32 1.0, %v2376_v11  ;;  %2286 = vmatmul.msk.bf16.vlgmr.msra.gmra.mxu1 %vm642_vm2, %v2991_v1 }
 0x4f9   : > { %v1616_v27 = vadd.f32 1.0, %v2378_v25 }
 0x4fa   : > { %2379 = vrcp.f32 %v1615_v26  ;;  %v1658_v34 = vand.u32 2147483648, %v1615_v26  ;;  %v1656_v44 = vand.u32 2147483647, %v1615_v26  ;;  %vm1652_vm4 = vweird.f32 %v1615_v26 }
 0x4fb   : > { %2381 = vrcp.f32 %v1616_v27  ;;  %v1673_v37 = vand.u32 2147483648, %v1616_v27  ;;  %v1671_v46 = vand.u32 2147483647, %v1616_v27  ;;  %vm1667_vm6 = vweird.f32 %v1616_v27 }
 0x4fc   : > { %v1780_v58 = vpop.f32.mrf.mxu2  ;;  %v1659_v48 = vor.u32 1.1754944e-38, %v1658_v34  ;;  %vm1657_vm7 = vcmp.eq.f32.partialorder %v1656_v44, 8.507059e+37 }
 0x4fd   : > { %v1809_v63 = vpop.f32.mrf.mxu3  ;;  %v1674_v50 = vor.u32 1.1754944e-38, %v1673_v37  ;;  %vm1672_vm0 = vcmp.eq.f32.partialorder %v1671_v46, 8.507059e+37  ;;  %v1781_v52 = vadd.f32 %v1780_v58, %v2698_v14 }
 0x4fe   : > { %v1810_v8 = vadd.f32 %v1809_v63, %v2698_v14 }
 0x4ff   : > { %v1823_v17 = vmax.f32 %v1781_v52, 0.0 }
 0x500   : > { %v2380_v28 = vpop.eup %2379  ;;  %v1824_v10 = vmax.f32 %v1810_v8, 0.0 }
 0x501   : > { %v2382_v31 = vpop.eup %2381  ;;  %v1648_v32 = vmul.f32 %v2380_v28, %v1615_v26  ;;  %vm1653_vm15 = vweird.f32 %v2380_v28 }
 0x502   : > { %v1663_v2 = vmul.f32 %v2382_v31, %v1616_v27  ;;  %vm1668_vm3 = vweird.f32 %v2382_v31  ;;  %vm1654_vm5 = vmor %vm1652_vm4, %vm1653_vm15 }
 0x503   : > { %v1649_v33 = vsub.f32 1.0, %v1648_v32  ;;  %vm1669_vm8 = vmor %vm1667_vm6, %vm1668_vm3 }
 0x504   : > { %v1664_v35 = vsub.f32 1.0, %v1663_v2  ;;  %v1783_v5 = vpop.f32.mrf.mxu2 }
 0x505   : > { %v1812_v36 = vpop.f32.mrf.mxu3  ;;  %v1650_v40 = vmul.f32 %v2380_v28, %v1649_v33  ;;  %v1784_v0 = vadd.f32 %v1783_v5, %v2702_v20 }
 0x506   : > { %v1665_v45 = vmul.f32 %v2382_v31, %v1664_v35  ;;  %v1813_v3 = vadd.f32 %v1812_v36, %v2702_v20 }
 0x507   : > { %v1651_v47 = vadd.f32 %v2380_v28, %v1650_v40  ;;  %2285 = vmatmul.msk.bf16.gmra.mxu0 %vm642_vm2, %v3008_v21  ;;  %v1827_v12 = vmax.f32 %v1784_v0, 0.0 }
 0x508   : > { %v1666_v49 = vadd.f32 %v2382_v31, %v1665_v45  ;;  %2287 = vmatmul.msk.bf16.gmra.mxu1 %vm642_vm2, %v3008_v21 }
 0x509   : > { %v1655_v41 = vsel %vm1654_vm5, %v2380_v28, %v1651_v47  ;;  %v1839_v20 = vpack.c.bf16 %v1827_v12, %v1823_v17 }
 0x50a   : > { %v1660_v51 = vsel %vm1657_vm7, %v1659_v48, %v1655_v41  ;;  %v1670_v6 = vsel %vm1669_vm8, %v2382_v31, %v1666_v49 }
 0x50b   : > { %1679 = vst [vmem:[%s2855_s18 + $0x50] sm:$0xff] %v1660_v51  ;;  %v1675_v54 = vsel %vm1672_vm0, %v1674_v50, %v1670_v6 }
 0x50c   : > { %1680 = vst [vmem:[%s2855_s18 + $0x58] sm:$0xff] %v1675_v54  ;;  %v1786_v55 = vpop.f32.mrf.mxu2 }
 0x50d   : > { %v1815_v56 = vpop.f32.mrf.mxu3  ;;  %v1787_v57 = vadd.f32 %v1786_v55, %v2696_v13 }
 0x50e   : > { %v1816_v59 = vadd.f32 %v1815_v56, %v2696_v13  ;;  %v1828_v13 = vmax.f32 %v1813_v3, 0.0 }
 0x50f   : > { %v1831_v42 = vmax.f32 %v1787_v57, 0.0 }
 0x510   : > { %v1832_v43 = vmax.f32 %v1816_v59, 0.0  ;;  %v1840_v23 = vpack.c.bf16 %v1828_v13, %v1824_v10 }
 0x514   : > { %v1789_v61 = vpop.f32.mrf.mxu2 }
 0x515   : > { %v1818_v62 = vpop.f32.mrf.mxu3  ;;  %v1790_v4 = vadd.f32 %v1789_v61, %v2700_v19 }
 0x516   : > { %v1819_v7 = vadd.f32 %v1818_v62, %v2700_v19 }
 0x517   : > { %v1835_v9 = vmax.f32 %v1790_v4, 0.0 }
 0x518   : > { %v1836_v53 = vmax.f32 %v1819_v7, 0.0 }
 0x519   : > { %v1843_v15 = vpack.c.bf16 %v1835_v9, %v1831_v42 }
 0x51a   : > { %v1844_v16 = vpack.c.bf16 %v1836_v53, %v1832_v43 }
 0x51b   : > { %1889 = vmatpush.bf16.msra.mxu2 %v1843_v15 }
 0x51c   : > { %1908 = vmatpush.bf16.msra.mxu3 %v1844_v16 }
 0x51f   : > { %1890 = vmatpush.bf16.msra.mxu2 %v1839_v20 }
 0x520   : > { %1909 = vmatpush.bf16.msra.mxu3 %v1840_v23 }
 0x522   : > { %2288 = vmatmul.msk.bf16.vlgmr.msra.gmra.mxu2 %vm642_vm2, %v2991_v1 }
 0x523   : > { %2290 = vmatmul.msk.bf16.vlgmr.msra.gmra.mxu3 %vm642_vm2, %v2991_v1 }
 0x532   : > { %2289 = vmatmul.msk.bf16.gmra.mxu2 %vm642_vm2, %v3008_v21 }
 0x533   : > { %2291 = vmatmul.msk.bf16.gmra.mxu3 %vm642_vm2, %v3008_v21 }
 0x574   : > { %v1854_v14 = vpop.f32.mrf.mxu0 }
 0x575   : > { %v1873_v19 = vpop.f32.mrf.mxu1  ;;  %v1855_v32 = vadd.f32 %v1854_v14, %v2767_v39 }
 0x576   : > { %v1874_v2 = vadd.f32 %v1873_v19, %v2767_v39 }
 0x577   : > { %v1921_v45 = vmax.f32 %v1855_v32, 0.0 }
 0x578   : > { %v1922_v46 = vmax.f32 %v1874_v2, 0.0 }
 0x57c   : > { %v1856_v24 = vpop.f32.mrf.mxu0 }
 0x57d   : > { %v1875_v18 = vpop.f32.mrf.mxu1  ;;  %v1857_v1 = vadd.f32 %v1856_v24, %v2759_v29 }
 0x57e   : > { %v1876_v28 = vadd.f32 %v1875_v18, %v2759_v29 }
 0x57f   : > { %v1925_v36 = vmax.f32 %v1857_v1, 0.0 }
 0x580   : > { %v1926_v40 = vmax.f32 %v1876_v28, 0.0 }
 0x581   : > { %v1937_v47 = vpack.c.bf16 %v1925_v36, %v1921_v45 }
 0x582   : > { %v1938_v48 = vpack.c.bf16 %v1926_v40, %v1922_v46 }
 0x584   : > { %v1859_v11 = vpop.f32.mrf.mxu0 }
 0x585   : > { %v1878_v25 = vpop.f32.mrf.mxu1  ;;  %v1860_v26 = vadd.f32 %v1859_v11, %v2755_v22 }
 0x586   : > { %v1879_v27 = vadd.f32 %v1878_v25, %v2755_v22 }
 0x587   : > { %v1929_v33 = vmax.f32 %v1860_v26, 0.0 }
 0x588   : > { %v1930_v34 = vmax.f32 %v1879_v27, 0.0 }
 0x58c   : > { %v1861_v58 = vpop.f32.mrf.mxu0 }
 0x58d   : > { %v1880_v63 = vpop.f32.mrf.mxu1  ;;  %v1862_v31 = vadd.f32 %v1861_v58, %v2761_v30 }
 0x58e   : > { %v1881_v21 = vadd.f32 %v1880_v63, %v2761_v30 }
 0x58f   : > { %v1933_v35 = vmax.f32 %v1862_v31, 0.0 }
 0x590   : > { %v1934_v5 = vmax.f32 %v1881_v21, 0.0 }
 0x591   : > { %v1941_v44 = vpack.c.bf16 %v1933_v35, %v1929_v33 }
 0x592   : > { %v1942_v37 = vpack.c.bf16 %v1934_v5, %v1930_v34 }
 0x593   : > { %1951 = vmatpush.bf16.msrb.mxu0 %v1941_v44 }
 0x594   : > { %1964 = vmatpush.bf16.msrb.mxu1 %v1942_v37 }
 0x597   : > { %1952 = vmatpush.bf16.msrb.mxu0 %v1937_v47 }
 0x598   : > { %1965 = vmatpush.bf16.msrb.mxu1 %v1938_v48 }
 0x59a   : > { %2292 = vmatmul.msk.bf16.vlgmr.msrb.gmra.mxu0 %vm642_vm2, %v3041_v60 }
 0x59b   : > { %2293 = vmatmul.msk.bf16.vlgmr.msrb.gmra.mxu1 %vm642_vm2, %v3041_v60 }
 0x5a5   : > { %v1892_v49 = vpop.f32.mrf.mxu2 }
 0x5a6   : > { %v1911_v41 = vpop.f32.mrf.mxu3  ;;  %v1893_v4 = vadd.f32 %v1892_v49, %v2767_v39 }
 0x5a7   : > { %v1912_v7 = vadd.f32 %v1911_v41, %v2767_v39 }
 0x5a8   : > { %v1923_v13 = vmax.f32 %v1893_v4, 0.0 }
 0x5a9   : > { %v1924_v15 = vmax.f32 %v1912_v7, 0.0 }
 0x5ad   : > { %v1894_v50 = vpop.f32.mrf.mxu2 }
 0x5ae   : > { %v1913_v51 = vpop.f32.mrf.mxu3  ;;  %v1895_v61 = vadd.f32 %v1894_v50, %v2759_v29 }
 0x5af   : > { %v1914_v62 = vadd.f32 %v1913_v51, %v2759_v29 }
 0x5b0   : > { %v1927_v9 = vmax.f32 %v1895_v61, 0.0 }
 0x5b2   : > { %v1939_v29 = vpack.c.bf16 %v1927_v9, %v1923_v13 }
 0x5b5   : > { %v1897_v6 = vpop.f32.mrf.mxu2 }
 0x5b6   : > { %v1916_v54 = vpop.f32.mrf.mxu3  ;;  %v1898_v55 = vadd.f32 %v1897_v6, %v2755_v22 }
 0x5b7   : > { %v1917_v56 = vadd.f32 %v1916_v54, %v2755_v22  ;;  %v1928_v22 = vmax.f32 %v1914_v62, 0.0 }
 0x5b8   : > { %v1931_v52 = vmax.f32 %v1898_v55, 0.0 }
 0x5b9   : > { %v1932_v8 = vmax.f32 %v1917_v56, 0.0  ;;  %v1940_v16 = vpack.c.bf16 %v1928_v22, %v1924_v15 }
 0x5bd   : > { %v1899_v57 = vpop.f32.mrf.mxu2 }
 0x5be   : > { %v1918_v59 = vpop.f32.mrf.mxu3  ;;  %v1900_v0 = vadd.f32 %v1899_v57, %v2761_v30 }
 0x5bf   : > { %v1919_v3 = vadd.f32 %v1918_v59, %v2761_v30 }
 0x5c0   : > { %v1935_v42 = vmax.f32 %v1900_v0, 0.0 }
 0x5c1   : > { %v1936_v43 = vmax.f32 %v1919_v3, 0.0 }
 0x5c2   : > { %v1943_v53 = vpack.c.bf16 %v1935_v42, %v1931_v52 }
 0x5c3   : > { %v1944_v12 = vpack.c.bf16 %v1936_v43, %v1932_v8 }
 0x5c4   : > { %1977 = vmatpush.bf16.msrb.mxu2 %v1943_v53 }
 0x5c5   : > { %1990 = vmatpush.bf16.msrb.mxu3 %v1944_v12 }
 0x5c8   : > { %1978 = vmatpush.bf16.msrb.mxu2 %v1939_v29 }
 0x5c9   : > { %1991 = vmatpush.bf16.msrb.mxu3 %v1940_v16 }
 0x5cb   : > { %2294 = vmatmul.msk.bf16.vlgmr.msrb.gmra.mxu2 %vm642_vm2, %v3041_v60 }
 0x5cc   : > { %2295 = vmatmul.msk.bf16.vlgmr.msrb.gmra.mxu3 %vm642_vm2, %v3041_v60 }
 0x617   : > { %v1954_v30 = vpop.f32.mrf.mxu0 }
 0x618   : > { %v1967_v39 = vpop.f32.mrf.mxu1  ;;  %v1955_v17 = vadd.f32 %v1954_v30, %v2840_v38 }
 0x619   : > { %v1968_v10 = vadd.f32 %v1967_v39, %v2840_v38 }
 0x61a   : > { %v2296_v20 = vmul.f32 -1.442695, %v1955_v17 }
 0x61b   : > { %v2297_v23 = vmul.f32 -1.442695, %v1968_v10 }
 0x61c   : > { %2383 = vpow2.f32 %v2296_v20 }
 0x61d   : > { %2385 = vpow2.f32 %v2297_v23 }
 0x61f   : > { %v1956_v14 = vpop.f32.mrf.mxu0 }
 0x620   : > { %v1969_v19 = vpop.f32.mrf.mxu1 }
 0x622   : > { %v2384_v24 = vpop.eup %2383 }
 0x623   : > { %v2386_v18 = vpop.eup %2385  ;;  %v2009_v11 = vadd.f32 1.0, %v2384_v24 }
 0x624   : > { %v2010_v25 = vadd.f32 1.0, %v2386_v18 }
 0x625   : > { %2387 = vrcp.f32 %v2009_v11  ;;  %v2024_v1 = vand.u32 2147483648, %v2009_v11  ;;  %v2022_v21 = vand.u32 2147483647, %v2009_v11  ;;  %vm2018_vm9 = vweird.f32 %v2009_v11 }
 0x626   : > { %2389 = vrcp.f32 %v2010_v25  ;;  %v2039_v32 = vand.u32 2147483648, %v2010_v25  ;;  %v2037_v33 = vand.u32 2147483647, %v2010_v25  ;;  %vm2033_vm11 = vweird.f32 %v2010_v25 }
 0x627   : > { %v2025_v35 = vor.u32 1.1754944e-38, %v2024_v1  ;;  %vm2023_vm12 = vcmp.eq.f32.partialorder %v2022_v21, 8.507059e+37 }
 0x628   : > { %v2040_v40 = vor.u32 1.1754944e-38, %v2039_v32  ;;  %vm2038_vm14 = vcmp.eq.f32.partialorder %v2037_v33, 8.507059e+37 }
 0x62b   : > { %v2388_v26 = vpop.eup %2387 }
 0x62c   : > { %v2390_v60 = vpop.eup %2389  ;;  %v2014_v27 = vmul.f32 %v2388_v26, %v2009_v11  ;;  %vm2019_vm2 = vweird.f32 %v2388_v26 }
 0x62d   : > { %v2029_v58 = vmul.f32 %v2390_v60, %v2010_v25  ;;  %vm2034_vm1 = vweird.f32 %v2390_v60  ;;  %vm2020_vm10 = vmor %vm2018_vm9, %vm2019_vm2 }
 0x62e   : > { %v2015_v63 = vsub.f32 1.0, %v2014_v27  ;;  %vm2035_vm13 = vmor %vm2033_vm11, %vm2034_vm1 }
 0x62f   : > { %v2030_v28 = vsub.f32 1.0, %v2029_v58 }
 0x630   : > { %v2016_v31 = vmul.f32 %v2388_v26, %v2015_v63 }
 0x631   : > { %v2031_v2 = vmul.f32 %v2390_v60, %v2030_v28 }
 0x632   : > { %v2017_v34 = vadd.f32 %v2388_v26, %v2016_v31 }
 0x633   : > { %v2032_v5 = vadd.f32 %v2390_v60, %v2031_v2 }
 0x634   : > { %v2021_v36 = vsel %vm2020_vm10, %v2388_v26, %v2017_v34 }
 0x635   : > { %v2026_v44 = vsel %vm2023_vm12, %v2025_v35, %v2021_v36  ;;  %v2036_v37 = vsel %vm2035_vm13, %v2390_v60, %v2032_v5 }
 0x636   : > { %2073 = vst [vmem:[%s2855_s18 + $0x60] sm:$0xff] %v2026_v44  ;;  %v2041_v45 = vsel %vm2038_vm14, %v2040_v40, %v2036_v37 }
 0x637   : > { %2074 = vst [vmem:[%s2855_s18 + $0x68] sm:$0xff] %v2041_v45 }
 0x64e   : > { %v1980_v46 = vpop.f32.mrf.mxu2 }
 0x64f   : > { %v1993_v47 = vpop.f32.mrf.mxu3  ;;  %v1981_v48 = vadd.f32 %v1980_v46, %v2840_v38 }
 0x650   : > { %v1994_v49 = vadd.f32 %v1993_v47, %v2840_v38 }
 0x651   : > { %v2298_v41 = vmul.f32 -1.442695, %v1981_v48 }
 0x652   : > { %v2299_v50 = vmul.f32 -1.442695, %v1994_v49 }
 0x653   : > { %2391 = vpow2.f32 %v2298_v41 }
 0x654   : > { %2393 = vpow2.f32 %v2299_v50 }
 0x656   : > { %v1982_v51 = vpop.f32.mrf.mxu2 }
 0x657   : > { %v1995_v6 = vpop.f32.mrf.mxu3 }
 0x659   : > { %v2392_v54 = vpop.eup %2391 }
 0x65a   : > { %v2394_v55 = vpop.eup %2393  ;;  %v2011_v56 = vadd.f32 1.0, %v2392_v54 }
 0x65b   : > { %v2012_v57 = vadd.f32 1.0, %v2394_v55 }
 0x65c   : > { %2395 = vrcp.f32 %v2011_v56  ;;  %v2054_v4 = vand.u32 2147483648, %v2011_v56  ;;  %v2052_v52 = vand.u32 2147483647, %v2011_v56  ;;  %vm2048_vm4 = vweird.f32 %v2011_v56 }
 0x65d   : > { %2397 = vrcp.f32 %v2012_v57  ;;  %v2069_v8 = vand.u32 2147483648, %v2012_v57  ;;  %v2067_v43 = vand.u32 2147483647, %v2012_v57  ;;  %vm2063_vm6 = vweird.f32 %v2012_v57 }
 0x65e   : > { %v2055_v22 = vor.u32 1.1754944e-38, %v2054_v4  ;;  %vm2053_vm7 = vcmp.eq.f32.partialorder %v2052_v52, 8.507059e+37 }
 0x65f   : > { %v2070_v13 = vor.u32 1.1754944e-38, %v2069_v8  ;;  %vm2068_vm0 = vcmp.eq.f32.partialorder %v2067_v43, 8.507059e+37 }
 0x662   : > { %v2396_v59 = vpop.eup %2395 }
 0x663   : > { %v2398_v61 = vpop.eup %2397  ;;  %v2044_v62 = vmul.f32 %v2396_v59, %v2011_v56  ;;  %vm2049_vm15 = vweird.f32 %v2396_v59 }
 0x664   : > { %v2059_v0 = vmul.f32 %v2398_v61, %v2012_v57  ;;  %vm2064_vm3 = vweird.f32 %v2398_v61  ;;  %vm2050_vm5 = vmor %vm2048_vm4, %vm2049_vm15 }
 0x665   : > { %v2045_v3 = vsub.f32 1.0, %v2044_v62  ;;  %vm2065_vm8 = vmor %vm2063_vm6, %vm2064_vm3 }
 0x666   : > { %v2060_v7 = vsub.f32 1.0, %v2059_v0 }
 0x667   : > { %v2046_v38 = vmul.f32 %v2396_v59, %v2045_v3 }
 0x668   : > { %v2061_v42 = vmul.f32 %v2398_v61, %v2060_v7 }
 0x669   : > { %v2047_v9 = vadd.f32 %v2396_v59, %v2046_v38 }
 0x66a   : > { %v2062_v53 = vadd.f32 %v2398_v61, %v2061_v42 }
 0x66b   : > { %v2051_v12 = vsel %vm2050_vm5, %v2396_v59, %v2047_v9 }
 0x66c   : > { %v2056_v15 = vsel %vm2053_vm7, %v2055_v22, %v2051_v12  ;;  %v2066_v29 = vsel %vm2065_vm8, %v2398_v61, %v2062_v53 }
 0x66d   : > { %2075 = vst [vmem:[%s2855_s18 + $0x70] sm:$0xff] %v2056_v15  ;;  %v2071_v16 = vsel %vm2068_vm0, %v2070_v13, %v2066_v29 }
 0x66e   : > { %2076 = vst [vmem:[%s2855_s18 + $0x78] sm:$0xff] %v2071_v16 }
 0x66f PF: > { %p14_p9 = scmp.ge.s32.totalorder %s2488_s28, 4   ;;  %s3187_s24 = smov %s2424_s25 }
 0x670   : > { %s3188_s25 = smov %s2497_s8  ;;  %s3189_s26 = smov %s2488_s28 }
 0x671   :  { %16 = sbr.rel (!%p14_p9) target bundleno = 2 (0x2), region = 106 }

</bundles_post_ra>
